<compile_context>
chip_gen: v7x
topology: tpu7x:2x2x1
jax: 0.10.0
libtpu: 0.0.40
codegen_flags: <defaults>
</compile_context>

<pallas_src>
import functools

import numpy as np
import jax
import jax.numpy as jnp
from jax import lax
from jax.experimental import pallas as pl
from jax.experimental.pallas import tpu as pltpu


_SMEM_SPEC = pl.BlockSpec(memory_space=pltpu.MemorySpace.SMEM)


# ---------------------------------------------------------------------------
# in-kernel helpers
# ---------------------------------------------------------------------------

def _rms_norm(x, scale):
    """Reference RMSNorm: per-batch Frobenius norm over the (seq, dim) slab."""
    b, m, d = x.shape
    ss = jnp.sum(jnp.sum(x * x, axis=2, keepdims=True), axis=1, keepdims=True)
    inv = float(np.sqrt(m * d)) * lax.rsqrt(ss)                  # (B, 1, 1)
    return scale[None, :, :] * (x * inv)


def _rope_pair_swap(y):
    """Even/odd lane pair swap: out[:, 2i] = y[:, 2i+1], out[:, 2i+1] = y[:, 2i]."""
    w = y.shape[-1]
    lane = lax.broadcasted_iota(jnp.int32, y.shape, 1)
    fwd = pltpu.roll(y, shift=w - 1, axis=1)     # fwd[:, j] = y[:, j+1]
    bwd = pltpu.roll(y, shift=1, axis=1)         # bwd[:, j] = y[:, j-1]
    return jnp.where((lane % 2) == 0, fwd, bwd)


def _swiglu(h, wg, bg, wl, bl, beta):
    hb = h.astype(jnp.bfloat16)
    g = jnp.dot(hb, wg, preferred_element_type=jnp.float32) + bg
    lin = jnp.dot(hb, wl, preferred_element_type=jnp.float32) + bl
    return g * jax.nn.sigmoid(beta * g) * lin


# ---------------------------------------------------------------------------
# fused whole-model kernel (grid axis = layer)
# ---------------------------------------------------------------------------

def _llama_kernel(x_emb_ref, cos_ref, sin_ref,
                  scale_ref, wqkv_ref, wo_ref, bo_ref,
                  ffw_ref, ffb_ref, wg_ref, bg_ref, wl_ref, bl_ref, betas_ref,
                  f1w_ref, f1b_ref, sgw_ref, sgb_ref, slw_ref, slb_ref,
                  f2w_ref, f2b_ref, hbeta_ref,
                  o_ref,
                  x_vmem,
                  *, nh):
    layer = pl.program_id(0)
    bsz, m, d = x_emb_ref.shape
    rows = bsz * m
    hd = nh * d
    bf16 = jnp.bfloat16

    # Layer 0: load the embedding activations into the VMEM-resident residual.
    @pl.when(layer == 0)
    def _():
        x_vmem[...] = x_emb_ref[...]

    x = x_vmem[...]                                    # (B, M, D) f32
    scale = scale_ref[0]                               # (M, D)

    # ------------- attention half: x = rms(x); x = x + MHA(x) -------------
    xn = _rms_norm(x, scale)
    qkv = jnp.dot(xn.reshape(rows, d).astype(bf16), wqkv_ref[0],
                  preferred_element_type=jnp.float32)  # (B*M, 3*nh*d)

    # RoPE on the fused Q|K columns.  1/sqrt(d) is folded into the Q half of
    # the cos/sin tables, so attention scores need no further scaling.  Tables
    # arrive as a single (M, d) pair and are widened in-register here (no
    # 2*nh host-side replication / extra HBM traffic).
    inv_sqrt_d = 1.0 / float(np.sqrt(d))
    cos = cos_ref[...]
    sin = sin_ref[...]
    cos_w = jnp.concatenate([cos * inv_sqrt_d] * nh + [cos] * nh, axis=-1)
    sin_w = jnp.concatenate([sin * inv_sqrt_d] * nh + [sin] * nh, axis=-1)
    cos_b = jnp.concatenate([cos_w] * bsz, axis=0)     # (B*M, 2*nh*d)
    sin_b = jnp.concatenate([sin_w] * bsz, axis=0)

    qk = qkv[:, :2 * hd]
    qk = qk * cos_b + _rope_pair_swap(qk) * sin_b

    row = lax.broadcasted_iota(jnp.int32, (bsz, m, m), 1)
    col = lax.broadcasted_iota(jnp.int32, (bsz, m, m), 2)
    causal = col <= row

    # Per-head causal attention (nh is small & static).  Head outputs go into
    # one (B*M, nh*d) slab followed by a single wide output projection.
    # TODO(synk): for realistic context windows switch to flash-style KV
    # tiling with an online softmax instead of materializing (M, M) scores.
    head_outs = []
    for h in range(nh):
        q_h = qk[:, h * d:(h + 1) * d].reshape(bsz, m, d).astype(bf16)
        k_h = qk[:, hd + h * d:hd + (h + 1) * d].reshape(bsz, m, d).astype(bf16)
        v_h = qkv[:, 2 * hd + h * d:2 * hd + (h + 1) * d].reshape(bsz, m, d).astype(bf16)
        s = jnp.einsum('bqd,bkd->bqk', q_h, k_h,
                       preferred_element_type=jnp.float32)
        s = jnp.where(causal, s, -1e30)                # f32-safe mask constant
        s = s - jnp.max(s, axis=-1, keepdims=True)
        p = jnp.exp(s)
        denom = jnp.sum(p, axis=-1, keepdims=True)
        pv = jnp.einsum('bqk,bkd->bqd', p.astype(bf16), v_h,
                        preferred_element_type=jnp.float32)
        head_outs.append((pv * pl.reciprocal(denom, approx=True)).reshape(rows, d))
        # TODO(synk): SDPA dropout_p=0.1 omitted (inference-mode identity).

    heads = jnp.concatenate(head_outs, axis=-1)        # (B*M, nh*d)
    attn = jnp.dot(heads.astype(bf16), wo_ref[0],
                   preferred_element_type=jnp.float32) + bo_ref[0]
    # TODO(synk): post-projection nn.Dropout(0.1) omitted (inference identity).
    x = xn + attn.reshape(bsz, m, d)    # residual onto the *normalized* x (matches torch ref)

    # ------------- feed-forward half: x = rms(x); x = x + FF(x) -----------
    xn2 = _rms_norm(x, scale)
    h0 = jnp.dot(xn2.reshape(rows, d).astype(bf16), ffw_ref[0],
                 preferred_element_type=jnp.float32) + ffb_ref[0]
    ff = _swiglu(h0, wg_ref[0], bg_ref[0], wl_ref[0], bl_ref[0], betas_ref[layer])
    x = xn2 + ff.reshape(bsz, m, d)

    x_vmem[...] = x                     # residual stays in VMEM across layers

    # ------------- LM head, fused into the last grid step -----------------
    @pl.when(layer == pl.num_programs(0) - 1)
    def _():
        h1 = jnp.dot(x.reshape(rows, d).astype(bf16), f1w_ref[...],
                     preferred_element_type=jnp.float32) + f1b_ref[...]
        sw = _swiglu(h1, sgw_ref[...], sgb_ref[...], slw_ref[...], slb_ref[...],
                     hbeta_ref[0])
        logits = jnp.dot(sw.astype(bf16), f2w_ref[...],
                         preferred_element_type=jnp.float32) + f2b_ref[...]
        o_ref[...] = logits.reshape(bsz, m, f2w_ref.shape[1])


# ---------------------------------------------------------------------------
# RoPE tables (keeps the reference's theta = 10000 ** (-2*(i-1)/D) quirk)
# ---------------------------------------------------------------------------

def rope_tables(M, D):
    cos = np.zeros((M, D), np.float64)
    sin = np.zeros((M, D), np.float64)
    for i in range(D // 2):
        theta = 10000.0 ** (-2.0 * (i - 1) / D)
        for m in range(M):
            mt = m * theta
            cos[m, 2 * i] = np.cos(mt)
            cos[m, 2 * i + 1] = np.cos(mt)
            sin[m, 2 * i] = np.sin(mt)
            sin[m, 2 * i + 1] = -np.sin(mt)
    return cos.astype(np.float32), sin.astype(np.float32)


# ---------------------------------------------------------------------------
# model forward (one pallas_call)
# ---------------------------------------------------------------------------

def llama_forward(params, idx, cfg):
    B, M = idx.shape
    d = cfg["d_model"]
    nh = cfg["n_heads"]
    V = cfg["vocab_size"]
    L = cfg["n_layers"]
    Vpad = ((V + 127) // 128) * 128               # lane-dense logits store

    cos_np, sin_np = rope_tables(M, d)
    cos = jnp.asarray(cos_np)
    sin = jnp.asarray(sin_np)

    # TODO(synk): embedding gather kept as plain-JAX glue (tiny; no Pallas gather).
    x = jnp.take(params["emb"], idx, axis=0)      # (B, M, d) f32

    scale_st = params["rms_scale"][:, :M, :]      # (L, M, d)
    hp = params["head"]
    f2w = jnp.pad(hp["f2_w"], ((0, 0), (0, Vpad - V)))
    f2b = jnp.pad(hp["f2_b"], ((0, 0), (0, Vpad - V)))

    def stacked(a):                               # per-layer block, indexed by grid axis
        nd = a.ndim
        return pl.BlockSpec((1,) + tuple(a.shape[1:]), lambda l: (l,) + (0,) * (nd - 1))

    def bcast(a):                                 # whole array, resident across the grid
        nd = a.ndim
        return pl.BlockSpec(tuple(a.shape), lambda l: (0,) * nd)

    operands = (x, cos, sin,
                scale_st, params["wqkv"], params["wo"], params["bo"],
                params["ff_w"], params["ff_b"],
                params["sw_wg"], params["sw_bg"], params["sw_wl"], params["sw_bl"],
                params["sw_beta"],
                hp["f1_w"], hp["f1_b"], hp["sg_w"], hp["sg_b"], hp["sl_w"], hp["sl_b"],
                f2w, f2b, hp["beta"])

    in_specs = [bcast(x), bcast(cos), bcast(sin),
                stacked(scale_st), stacked(params["wqkv"]), stacked(params["wo"]),
                stacked(params["bo"]), stacked(params["ff_w"]), stacked(params["ff_b"]),
                stacked(params["sw_wg"]), stacked(params["sw_bg"]),
                stacked(params["sw_wl"]), stacked(params["sw_bl"]),
                _SMEM_SPEC,
                bcast(hp["f1_w"]), bcast(hp["f1_b"]), bcast(hp["sg_w"]), bcast(hp["sg_b"]),
                bcast(hp["sl_w"]), bcast(hp["sl_b"]), bcast(f2w), bcast(f2b),
                _SMEM_SPEC]

    # Advisory cost estimate so XLA schedules around the fused custom call.
    flops_layer = (2 * B * M * d * (3 * nh * d)            # fused QKV proj
                   + nh * 2 * (2 * B * M * M * d)          # scores + P@V
                   + 2 * B * M * (nh * d) * d              # wide output proj
                   + 3 * 2 * B * M * d * d)                # FF linear + SwiGLU
    flops_head = 3 * 2 * B * M * d * d + 2 * B * M * d * Vpad
    transcend = L * (nh * B * M * M + B * M * d) + B * M * d
    bytes_acc = sum(int(np.prod(a.shape)) * a.dtype.itemsize for a in operands) \
        + B * M * Vpad * 4
    cost = pl.CostEstimate(flops=int(L * flops_layer + flops_head),
                           transcendentals=int(transcend),
                           bytes_accessed=int(bytes_acc))

    logits = pl.pallas_call(
        functools.partial(_llama_kernel, nh=nh),
        out_shape=jax.ShapeDtypeStruct((B, M, Vpad), jnp.float32),
        grid=(L,),
        in_specs=in_specs,
        out_specs=pl.BlockSpec((B, M, Vpad), lambda l: (0, 0, 0)),
        scratch_shapes=[pltpu.VMEM((B, M, d), jnp.float32)],
        compiler_params=pltpu.CompilerParams(
            # Layers are a sequential carry over the VMEM-resident residual.
            # (On v7x with large B one would add a "parallel" batch grid axis.)
            dimension_semantics=("arbitrary",),
            vmem_limit_bytes=32 * 1024 * 1024),
        cost_estimate=cost,
    )(*operands)

    return logits[:, :, :V]


# ---------------------------------------------------------------------------
# deterministic parameter init (weights bf16, biases / tables / scales f32)
# ---------------------------------------------------------------------------

def init_params(key, cfg):
    d = cfg["d_model"]
    nh = cfg["n_heads"]
    cw = cfg["context_window"]
    V = cfg["vocab_size"]
    L = cfg["n_layers"]
    wdt = jnp.bfloat16

    def lin(k, i, o, s=0.05):
        kw, kb = jax.random.split(k)
        return ((s * jax.random.normal(kw, (i, o), jnp.float32)).astype(wdt),
                s * jax.random.normal(kb, (1, o), jnp.float32))

    keys = jax.random.split(key, 2 + L)
    emb = 0.1 * jax.random.normal(keys[0], (V, d), jnp.float32)

    wqkv, wo, bo, ffw, ffb, wg, bg, wl, bl = ([] for _ in range(9))
    for li in range(L):
        bk = jax.random.split(keys[1 + li], 3 * nh + 4)
        wq = [0.05 * jax.random.normal(bk[3 * h + 0], (d, d), jnp.float32) for h in range(nh)]
        wk = [0.05 * jax.random.normal(bk[3 * h + 1], (d, d), jnp.float32) for h in range(nh)]
        wv = [0.05 * jax.random.normal(bk[3 * h + 2], (d, d), jnp.float32) for h in range(nh)]
        wqkv.append(jnp.concatenate(wq + wk + wv, axis=1).astype(wdt))   # (d, 3*nh*d)
        base = 3 * nh
        w, b = lin(bk[base + 0], nh * d, d); wo.append(w); bo.append(b)
        w, b = lin(bk[base + 1], d, d);      ffw.append(w); ffb.append(b)
        w, b = lin(bk[base + 2], d, d);      wg.append(w);  bg.append(b)
        w, b = lin(bk[base + 3], d, d);      wl.append(w);  bl.append(b)

    fk = jax.random.split(keys[-1], 4)
    f1_w, f1_b = lin(fk[0], d, d)
    sg_w, sg_b = lin(fk[1], d, d)
    sl_w, sl_b = lin(fk[2], d, d)
    f2_w, f2_b = lin(fk[3], d, V)
    head = dict(f1_w=f1_w, f1_b=f1_b, sg_w=sg_w, sg_b=sg_b, sl_w=sl_w, sl_b=sl_b,
                beta=jnp.ones((1,), jnp.float32), f2_w=f2_w, f2_b=f2_b)

    return dict(
        emb=emb,
        rms_scale=jnp.ones((L, cw, d), jnp.float32),
        wqkv=jnp.stack(wqkv),
        wo=jnp.stack(wo), bo=jnp.stack(bo),
        ff_w=jnp.stack(ffw), ff_b=jnp.stack(ffb),
        sw_wg=jnp.stack(wg), sw_bg=jnp.stack(bg),
        sw_wl=jnp.stack(wl), sw_bl=jnp.stack(bl),
        sw_beta=jnp.ones((L,), jnp.float32),
        head=head,
    )


# ---------------------------------------------------------------------------

if __name__ == "__main__":
    cfg = dict(vocab_size=64, d_model=32, context_window=16, n_heads=2, n_layers=2)

    root = jax.random.PRNGKey(0)
    k_params, k_idx = jax.random.split(root)
    params = init_params(k_params, cfg)

    B, S = 2, 8
    idx = jax.random.randint(k_idx, (B, S), 0, cfg["vocab_size"], dtype=jnp.int32)

    fwd = jax.jit(functools.partial(llama_forward, cfg=cfg))
    logits = jax.block_until_ready(fwd(params, idx))

    assert logits.shape == (B, S, cfg["vocab_size"])
    assert bool(jnp.all(jnp.isfinite(logits)))
    print("KERNEL_OK")
</pallas_src>

<mosaic_0001>
module attributes {stable_mosaic.version = 11 : i64} {
  func.func @_llama_kernel(%arg0: i32, %arg1: memref<2x8x32xf32, #tpu.memory_space<vmem>>, %arg2: memref<8x32xf32, #tpu.memory_space<vmem>>, %arg3: memref<8x32xf32, #tpu.memory_space<vmem>>, %arg4: memref<1x8x32xf32, #tpu.memory_space<vmem>>, %arg5: memref<1x32x192xbf16, #tpu.memory_space<vmem>>, %arg6: memref<1x64x32xbf16, #tpu.memory_space<vmem>>, %arg7: memref<1x1x32xf32, #tpu.memory_space<vmem>>, %arg8: memref<1x32x32xbf16, #tpu.memory_space<vmem>>, %arg9: memref<1x1x32xf32, #tpu.memory_space<vmem>>, %arg10: memref<1x32x32xbf16, #tpu.memory_space<vmem>>, %arg11: memref<1x1x32xf32, #tpu.memory_space<vmem>>, %arg12: memref<1x32x32xbf16, #tpu.memory_space<vmem>>, %arg13: memref<1x1x32xf32, #tpu.memory_space<vmem>>, %arg14: memref<2xf32, #tpu.memory_space<smem>>, %arg15: memref<32x32xbf16, #tpu.memory_space<vmem>>, %arg16: memref<1x32xf32, #tpu.memory_space<vmem>>, %arg17: memref<32x32xbf16, #tpu.memory_space<vmem>>, %arg18: memref<1x32xf32, #tpu.memory_space<vmem>>, %arg19: memref<32x32xbf16, #tpu.memory_space<vmem>>, %arg20: memref<1x32xf32, #tpu.memory_space<vmem>>, %arg21: memref<32x128xbf16, #tpu.memory_space<vmem>>, %arg22: memref<1x128xf32, #tpu.memory_space<vmem>>, %arg23: memref<1xf32, #tpu.memory_space<smem>>, %arg24: memref<2x8x128xf32, #tpu.memory_space<vmem>>, %arg25: memref<2x8x32xf32, #tpu.memory_space<vmem>>) attributes {dimension_semantics = [#tpu.dimension_semantics<arbitrary>], iteration_bounds = array<i64: 2>, scalar_prefetch = 0 : i64, scratch_operands = 1 : i64, tpu.core_type = #tpu.core_type<tc>, window_params = [{pipeline_mode = #tpu.pipeline_mode<synchronous>, transform_indices = @transform_0, window_bounds = array<i64: 2, 8, 32>}, {pipeline_mode = #tpu.pipeline_mode<synchronous>, transform_indices = @transform_1, window_bounds = array<i64: 8, 32>}, {pipeline_mode = #tpu.pipeline_mode<synchronous>, transform_indices = @transform_2, window_bounds = array<i64: 8, 32>}, {transform_indices = @transform_3, window_bounds = array<i64: 1, 8, 32>}, {transform_indices = @transform_4, window_bounds = array<i64: 1, 32, 192>}, {transform_indices = @transform_5, window_bounds = array<i64: 1, 64, 32>}, {transform_indices = @transform_6, window_bounds = array<i64: 1, 1, 32>}, {transform_indices = @transform_7, window_bounds = array<i64: 1, 32, 32>}, {transform_indices = @transform_8, window_bounds = array<i64: 1, 1, 32>}, {transform_indices = @transform_9, window_bounds = array<i64: 1, 32, 32>}, {transform_indices = @transform_10, window_bounds = array<i64: 1, 1, 32>}, {transform_indices = @transform_11, window_bounds = array<i64: 1, 32, 32>}, {transform_indices = @transform_12, window_bounds = array<i64: 1, 1, 32>}, {transform_indices = @transform_13, window_bounds = array<i64: 2>}, {pipeline_mode = #tpu.pipeline_mode<synchronous>, transform_indices = @transform_14, window_bounds = array<i64: 32, 32>}, {pipeline_mode = #tpu.pipeline_mode<synchronous>, transform_indices = @transform_15, window_bounds = array<i64: 1, 32>}, {pipeline_mode = #tpu.pipeline_mode<synchronous>, transform_indices = @transform_16, window_bounds = array<i64: 32, 32>}, {pipeline_mode = #tpu.pipeline_mode<synchronous>, transform_indices = @transform_17, window_bounds = array<i64: 1, 32>}, {pipeline_mode = #tpu.pipeline_mode<synchronous>, transform_indices = @transform_18, window_bounds = array<i64: 32, 32>}, {pipeline_mode = #tpu.pipeline_mode<synchronous>, transform_indices = @transform_19, window_bounds = array<i64: 1, 32>}, {pipeline_mode = #tpu.pipeline_mode<synchronous>, transform_indices = @transform_20, window_bounds = array<i64: 32, 128>}, {pipeline_mode = #tpu.pipeline_mode<synchronous>, transform_indices = @transform_21, window_bounds = array<i64: 1, 128>}, {transform_indices = @transform_22, window_bounds = array<i64: 1>}, {pipeline_mode = #tpu.pipeline_mode<synchronous>, transform_indices = @transform_23, window_bounds = array<i64: 2, 8, 128>}]} {
    %c0_i32 = arith.constant 0 : i32
    %0 = arith.cmpi eq, %arg0, %c0_i32 : i32
    %1 = arith.extui %0 : i1 to i32
    %c0_i32_0 = arith.constant 0 : i32
    %2 = arith.cmpi ne, %1, %c0_i32_0 : i32
    scf.if %2 {
      %c0_71 = arith.constant 0 : index
      %c0_72 = arith.constant 0 : index
      %c0_73 = arith.constant 0 : index
      %178 = vector.load %arg1[%c0_71, %c0_72, %c0_73] : memref<2x8x32xf32, #tpu.memory_space<vmem>>, vector<2x8x32xf32>
      %c0_74 = arith.constant 0 : index
      %c0_75 = arith.constant 0 : index
      %c0_76 = arith.constant 0 : index
      %179 = vector.load %arg25[%c0_74, %c0_75, %c0_76] : memref<2x8x32xf32, #tpu.memory_space<vmem>>, vector<2x8x32xf32>
      tpu.vector_store %arg25[%c0_74, %c0_75, %c0_76], %178 {strides = array<i32>} : memref<2x8x32xf32, #tpu.memory_space<vmem>>, vector<2x8x32xf32>,
    } else {
    }
    %c0 = arith.constant 0 : index
    %c0_1 = arith.constant 0 : index
    %c0_2 = arith.constant 0 : index
    %3 = vector.load %arg25[%c0, %c0_1, %c0_2] : memref<2x8x32xf32, #tpu.memory_space<vmem>>, vector<2x8x32xf32>
    %c0_3 = arith.constant 0 : index
    %c0_4 = arith.constant 0 : index
    %c0_5 = arith.constant 0 : index
    %4 = vector.load %arg4[%c0_3, %c0_4, %c0_5] : memref<1x8x32xf32, #tpu.memory_space<vmem>>, vector<1x8x32xf32>
    %5 = vector.shape_cast %4 : vector<1x8x32xf32> to vector<8x32xf32>
    %6 = arith.mulf %3, %3 : vector<2x8x32xf32>
    %cst = arith.constant dense<0.000000e+00> : vector<2x8xf32>
    %7 = vector.multi_reduction <add>, %6, %cst [2] : vector<2x8x32xf32> to vector<2x8xf32>
    %8 = vector.shape_cast %7 : vector<2x8xf32> to vector<2x8x1xf32>
    %cst_6 = arith.constant dense<0.000000e+00> : vector<2x1xf32>
    %9 = vector.multi_reduction <add>, %8, %cst_6 [1] : vector<2x8x1xf32> to vector<2x1xf32>
    %10 = vector.shape_cast %9 : vector<2x1xf32> to vector<2x1x1xf32>
    %11 = math.rsqrt %10 : vector<2x1x1xf32>
    %cst_7 = arith.constant 1.600000e+01 : f32
    %12 = vector.broadcast %cst_7 : f32 to vector<2x1x1xf32>
    %13 = arith.mulf %12, %11 : vector<2x1x1xf32>
    %14 = vector.shape_cast %5 : vector<8x32xf32> to vector<1x8x32xf32>
    %15 = vector.broadcast %13 : vector<2x1x1xf32> to vector<2x8x32xf32>
    %16 = arith.mulf %3, %15 : vector<2x8x32xf32>
    %17 = vector.broadcast %14 : vector<1x8x32xf32> to vector<2x8x32xf32>
    %18 = arith.mulf %17, %16 : vector<2x8x32xf32>
    %19 = vector.shape_cast %18 : vector<2x8x32xf32> to vector<16x32xf32>
    %20 = arith.truncf %19 : vector<16x32xf32> to vector<16x32xbf16>
    %c0_8 = arith.constant 0 : index
    %c0_9 = arith.constant 0 : index
    %c0_10 = arith.constant 0 : index
    %21 = vector.load %arg5[%c0_8, %c0_9, %c0_10] : memref<1x32x192xbf16, #tpu.memory_space<vmem>>, vector<1x32x192xbf16>
    %22 = vector.shape_cast %21 : vector<1x32x192xbf16> to vector<32x192xbf16>
    %cst_11 = arith.constant dense<0.000000e+00> : vector<16x192xf32>
    %23 = tpu.matmul %20, %22, %cst_11 {dimension_numbers = #tpu.dot_dimension_numbers<[1], [0], [0], [1], [0, 0, 1, 1], [], []>} : vector<16x32xbf16>, vector<32x192xbf16>, vector<16x192xf32> -> vector<16x192xf32>
    %c0_12 = arith.constant 0 : index
    %c0_13 = arith.constant 0 : index
    %24 = vector.load %arg2[%c0_12, %c0_13] : memref<8x32xf32, #tpu.memory_space<vmem>>, vector<8x32xf32>
    %c0_14 = arith.constant 0 : index
    %c0_15 = arith.constant 0 : index
    %25 = vector.load %arg3[%c0_14, %c0_15] : memref<8x32xf32, #tpu.memory_space<vmem>>, vector<8x32xf32>
    %cst_16 = arith.constant 0.176776692 : f32
    %26 = vector.broadcast %cst_16 : f32 to vector<8x32xf32>
    %27 = arith.mulf %24, %26 : vector<8x32xf32>
    %28 = tpu.concatenate %27, %27, %24, %24 in 1 : vector<8x32xf32>, vector<8x32xf32>, vector<8x32xf32>, vector<8x32xf32> -> vector<8x128xf32>
    %cst_17 = arith.constant 0.176776692 : f32
    %29 = vector.broadcast %cst_17 : f32 to vector<8x32xf32>
    %30 = arith.mulf %25, %29 : vector<8x32xf32>
    %31 = tpu.concatenate %30, %30, %25, %25 in 1 : vector<8x32xf32>, vector<8x32xf32>, vector<8x32xf32>, vector<8x32xf32> -> vector<8x128xf32>
    %32 = tpu.concatenate %28, %28 in 0 : vector<8x128xf32>, vector<8x128xf32> -> vector<16x128xf32>
    %33 = tpu.concatenate %31, %31 in 0 : vector<8x128xf32>, vector<8x128xf32> -> vector<16x128xf32>
    %34 = vector.extract_strided_slice %23 {offsets = [0, 0], sizes = [16, 128], strides = [1, 1]} : vector<16x192xf32> to vector<16x128xf32>
    %35 = arith.mulf %34, %32 : vector<16x128xf32>
    %36 = tpu.iota {dimensions = array<i32: 1>} : vector<16x128xi32>
    %c127_i32 = arith.constant 127 : i32
    %37 = tpu.dynamic_rotate %34 by %c127_i32 dim 1 : vector<16x128xf32>, i32 -> vector<16x128xf32>
    %c1_i32 = arith.constant 1 : i32
    %38 = tpu.dynamic_rotate %34 by %c1_i32 dim 1 : vector<16x128xf32>, i32 -> vector<16x128xf32>
    %c2_i32 = arith.constant 2 : i32
    %c0_i32_18 = arith.constant 0 : i32
    %39 = arith.cmpi eq, %c2_i32, %c0_i32_18 : i32
    %c1_i32_19 = arith.constant 1 : i32
    %40 = arith.select %39, %c1_i32_19, %c2_i32 : i32
    %41 = vector.broadcast %40 : i32 to vector<16x128xi32>
    %42 = arith.remsi %36, %41 : vector<16x128xi32>
    %c0_i32_20 = arith.constant 0 : i32
    %43 = vector.broadcast %c0_i32_20 : i32 to vector<16x128xi32>
    %44 = arith.cmpi ne, %42, %43 : vector<16x128xi32>
    %c0_i32_21 = arith.constant 0 : i32
    %45 = vector.broadcast %c0_i32_21 : i32 to vector<16x128xi32>
    %46 = arith.cmpi slt, %42, %45 : vector<16x128xi32>
    %c0_i32_22 = arith.constant 0 : i32
    %47 = arith.cmpi slt, %40, %c0_i32_22 : i32
    %48 = vector.broadcast %47 : i1 to vector<16x128xi1>
    %49 = vector.broadcast %48 : vector<16x128xi1> to vector<16x128xi1>
    %50 = arith.xori %46, %49 : vector<16x128xi1>
    %51 = arith.andi %50, %44 : vector<16x128xi1>
    %52 = vector.broadcast %40 : i32 to vector<16x128xi32>
    %53 = arith.addi %42, %52 : vector<16x128xi32>
    %54 = arith.select %51, %53, %42 : vector<16x128xi1>, vector<16x128xi32>
    %c0_i32_23 = arith.constant 0 : i32
    %55 = vector.broadcast %c0_i32_23 : i32 to vector<16x128xi32>
    %56 = arith.cmpi eq, %54, %55 : vector<16x128xi32>
    %57 = arith.select %56, %37, %38 : vector<16x128xi1>, vector<16x128xf32>
    %58 = arith.mulf %57, %33 : vector<16x128xf32>
    %59 = arith.addf %35, %58 : vector<16x128xf32>
    %60 = tpu.iota {dimensions = array<i32: 1>} : vector<2x8x8xi32>
    %61 = tpu.iota {dimensions = array<i32: 2>} : vector<2x8x8xi32>
    %62 = arith.cmpi sle, %61, %60 : vector<2x8x8xi32>
    %63 = vector.extract_strided_slice %59 {offsets = [0, 0], sizes = [16, 32], strides = [1, 1]} : vector<16x128xf32> to vector<16x32xf32>
    %64 = vector.shape_cast %63 : vector<16x32xf32> to vector<2x8x32xf32>
    %65 = arith.truncf %64 : vector<2x8x32xf32> to vector<2x8x32xbf16>
    %66 = vector.extract_strided_slice %59 {offsets = [0, 64], sizes = [16, 32], strides = [1, 1]} : vector<16x128xf32> to vector<16x32xf32>
    %67 = vector.shape_cast %66 : vector<16x32xf32> to vector<2x8x32xf32>
    %68 = arith.truncf %67 : vector<2x8x32xf32> to vector<2x8x32xbf16>
    %69 = vector.extract_strided_slice %23 {offsets = [0, 128], sizes = [16, 32], strides = [1, 1]} : vector<16x192xf32> to vector<16x32xf32>
    %70 = vector.shape_cast %69 : vector<16x32xf32> to vector<2x8x32xf32>
    %71 = arith.truncf %70 : vector<2x8x32xf32> to vector<2x8x32xbf16>
    "tpu.trace_start"() <{level = 10 : i32, message = "bqd,bkd->bqk"}> : () -> ()
    %cst_24 = arith.constant dense<0.000000e+00> : vector<2x8x8xf32>
    %72 = tpu.matmul %65, %68, %cst_24 {dimension_numbers = #tpu.dot_dimension_numbers<[2], [2], [1], [1], [0, 0, 0, 1, 1, 1], [0], [0]>} : vector<2x8x32xbf16>, vector<2x8x32xbf16>, vector<2x8x8xf32> -> vector<2x8x8xf32>
    %cst_25 = arith.constant -1.000000e+30 : f32
    "tpu.trace_stop"() : () -> ()
    %73 = vector.broadcast %cst_25 : f32 to vector<2x8x8xf32>
    %74 = arith.select %62, %72, %73 : vector<2x8x8xi1>, vector<2x8x8xf32>
    %cst_26 = arith.constant dense<0xFF800000> : vector<2x8xf32>
    %75 = vector.multi_reduction <maximumf>, %74, %cst_26 [2] : vector<2x8x8xf32> to vector<2x8xf32>
    %76 = vector.shape_cast %75 : vector<2x8xf32> to vector<2x8x1xf32>
    %77 = vector.broadcast %76 : vector<2x8x1xf32> to vector<2x8x8xf32>
    %78 = arith.subf %74, %77 : vector<2x8x8xf32>
    %79 = math.exp %78 : vector<2x8x8xf32>
    %cst_27 = arith.constant dense<0.000000e+00> : vector<2x8xf32>
    %80 = vector.multi_reduction <add>, %79, %cst_27 [2] : vector<2x8x8xf32> to vector<2x8xf32>
    %81 = vector.shape_cast %80 : vector<2x8xf32> to vector<2x8x1xf32>
    %82 = arith.truncf %79 : vector<2x8x8xf32> to vector<2x8x8xbf16>
    "tpu.trace_start"() <{level = 10 : i32, message = "bqk,bkd->bqd"}> : () -> ()
    %cst_28 = arith.constant dense<0.000000e+00> : vector<2x8x32xf32>
    %83 = tpu.matmul %82, %71, %cst_28 {dimension_numbers = #tpu.dot_dimension_numbers<[2], [1], [1], [2], [0, 0, 0, 1, 1, 2], [0], [0]>} : vector<2x8x8xbf16>, vector<2x8x32xbf16>, vector<2x8x32xf32> -> vector<2x8x32xf32>
    "tpu.trace_stop"() : () -> ()
    %84 = tpu.reciprocal %81 {approx = true} : vector<2x8x1xf32> -> vector<2x8x1xf32>
    %85 = vector.broadcast %84 : vector<2x8x1xf32> to vector<2x8x32xf32>
    %86 = arith.mulf %83, %85 : vector<2x8x32xf32>
    %87 = vector.shape_cast %86 : vector<2x8x32xf32> to vector<16x32xf32>
    %88 = vector.extract_strided_slice %59 {offsets = [0, 32], sizes = [16, 32], strides = [1, 1]} : vector<16x128xf32> to vector<16x32xf32>
    %89 = vector.shape_cast %88 : vector<16x32xf32> to vector<2x8x32xf32>
    %90 = arith.truncf %89 : vector<2x8x32xf32> to vector<2x8x32xbf16>
    %91 = vector.extract_strided_slice %59 {offsets = [0, 96], sizes = [16, 32], strides = [1, 1]} : vector<16x128xf32> to vector<16x32xf32>
    %92 = vector.shape_cast %91 : vector<16x32xf32> to vector<2x8x32xf32>
    %93 = arith.truncf %92 : vector<2x8x32xf32> to vector<2x8x32xbf16>
    %94 = vector.extract_strided_slice %23 {offsets = [0, 160], sizes = [16, 32], strides = [1, 1]} : vector<16x192xf32> to vector<16x32xf32>
    %95 = vector.shape_cast %94 : vector<16x32xf32> to vector<2x8x32xf32>
    %96 = arith.truncf %95 : vector<2x8x32xf32> to vector<2x8x32xbf16>
    "tpu.trace_start"() <{level = 10 : i32, message = "bqd,bkd->bqk"}> : () -> ()
    %cst_29 = arith.constant dense<0.000000e+00> : vector<2x8x8xf32>
    %97 = tpu.matmul %90, %93, %cst_29 {dimension_numbers = #tpu.dot_dimension_numbers<[2], [2], [1], [1], [0, 0, 0, 1, 1, 1], [0], [0]>} : vector<2x8x32xbf16>, vector<2x8x32xbf16>, vector<2x8x8xf32> -> vector<2x8x8xf32>
    %cst_30 = arith.constant -1.000000e+30 : f32
    "tpu.trace_stop"() : () -> ()
    %98 = vector.broadcast %cst_30 : f32 to vector<2x8x8xf32>
    %99 = arith.select %62, %97, %98 : vector<2x8x8xi1>, vector<2x8x8xf32>
    %cst_31 = arith.constant dense<0xFF800000> : vector<2x8xf32>
    %100 = vector.multi_reduction <maximumf>, %99, %cst_31 [2] : vector<2x8x8xf32> to vector<2x8xf32>
    %101 = vector.shape_cast %100 : vector<2x8xf32> to vector<2x8x1xf32>
    %102 = vector.broadcast %101 : vector<2x8x1xf32> to vector<2x8x8xf32>
    %103 = arith.subf %99, %102 : vector<2x8x8xf32>
    %104 = math.exp %103 : vector<2x8x8xf32>
    %cst_32 = arith.constant dense<0.000000e+00> : vector<2x8xf32>
    %105 = vector.multi_reduction <add>, %104, %cst_32 [2] : vector<2x8x8xf32> to vector<2x8xf32>
    %106 = vector.shape_cast %105 : vector<2x8xf32> to vector<2x8x1xf32>
    %107 = arith.truncf %104 : vector<2x8x8xf32> to vector<2x8x8xbf16>
    "tpu.trace_start"() <{level = 10 : i32, message = "bqk,bkd->bqd"}> : () -> ()
    %cst_33 = arith.constant dense<0.000000e+00> : vector<2x8x32xf32>
    %108 = tpu.matmul %107, %96, %cst_33 {dimension_numbers = #tpu.dot_dimension_numbers<[2], [1], [1], [2], [0, 0, 0, 1, 1, 2], [0], [0]>} : vector<2x8x8xbf16>, vector<2x8x32xbf16>, vector<2x8x32xf32> -> vector<2x8x32xf32>
    "tpu.trace_stop"() : () -> ()
    %109 = tpu.reciprocal %106 {approx = true} : vector<2x8x1xf32> -> vector<2x8x1xf32>
    %110 = vector.broadcast %109 : vector<2x8x1xf32> to vector<2x8x32xf32>
    %111 = arith.mulf %108, %110 : vector<2x8x32xf32>
    %112 = vector.shape_cast %111 : vector<2x8x32xf32> to vector<16x32xf32>
    %113 = tpu.concatenate %87, %112 in 1 : vector<16x32xf32>, vector<16x32xf32> -> vector<16x64xf32>
    %114 = arith.truncf %113 : vector<16x64xf32> to vector<16x64xbf16>
    %c0_34 = arith.constant 0 : index
    %c0_35 = arith.constant 0 : index
    %c0_36 = arith.constant 0 : index
    %115 = vector.load %arg6[%c0_34, %c0_35, %c0_36] : memref<1x64x32xbf16, #tpu.memory_space<vmem>>, vector<1x64x32xbf16>
    %116 = vector.shape_cast %115 : vector<1x64x32xbf16> to vector<64x32xbf16>
    %cst_37 = arith.constant dense<0.000000e+00> : vector<16x32xf32>
    %117 = tpu.matmul %114, %116, %cst_37 {dimension_numbers = #tpu.dot_dimension_numbers<[1], [0], [0], [1], [0, 0, 1, 1], [], []>} : vector<16x64xbf16>, vector<64x32xbf16>, vector<16x32xf32> -> vector<16x32xf32>
    %c0_38 = arith.constant 0 : index
    %c0_39 = arith.constant 0 : index
    %c0_40 = arith.constant 0 : index
    %118 = vector.load %arg7[%c0_38, %c0_39, %c0_40] : memref<1x1x32xf32, #tpu.memory_space<vmem>>, vector<1x1x32xf32>
    %119 = vector.shape_cast %118 : vector<1x1x32xf32> to vector<1x32xf32>
    %120 = vector.broadcast %119 : vector<1x32xf32> to vector<16x32xf32>
    %121 = arith.addf %117, %120 : vector<16x32xf32>
    %122 = vector.shape_cast %121 : vector<16x32xf32> to vector<2x8x32xf32>
    %123 = arith.addf %18, %122 : vector<2x8x32xf32>
    %124 = arith.mulf %123, %123 : vector<2x8x32xf32>
    %cst_41 = arith.constant dense<0.000000e+00> : vector<2x8xf32>
    %125 = vector.multi_reduction <add>, %124, %cst_41 [2] : vector<2x8x32xf32> to vector<2x8xf32>
    %126 = vector.shape_cast %125 : vector<2x8xf32> to vector<2x8x1xf32>
    %cst_42 = arith.constant dense<0.000000e+00> : vector<2x1xf32>
    %127 = vector.multi_reduction <add>, %126, %cst_42 [1] : vector<2x8x1xf32> to vector<2x1xf32>
    %128 = vector.shape_cast %127 : vector<2x1xf32> to vector<2x1x1xf32>
    %129 = math.rsqrt %128 : vector<2x1x1xf32>
    %cst_43 = arith.constant 1.600000e+01 : f32
    %130 = vector.broadcast %cst_43 : f32 to vector<2x1x1xf32>
    %131 = arith.mulf %130, %129 : vector<2x1x1xf32>
    %132 = vector.shape_cast %5 : vector<8x32xf32> to vector<1x8x32xf32>
    %133 = vector.broadcast %131 : vector<2x1x1xf32> to vector<2x8x32xf32>
    %134 = arith.mulf %123, %133 : vector<2x8x32xf32>
    %135 = vector.broadcast %132 : vector<1x8x32xf32> to vector<2x8x32xf32>
    %136 = arith.mulf %135, %134 : vector<2x8x32xf32>
    %137 = vector.shape_cast %136 : vector<2x8x32xf32> to vector<16x32xf32>
    %138 = arith.truncf %137 : vector<16x32xf32> to vector<16x32xbf16>
    %c0_44 = arith.constant 0 : index
    %c0_45 = arith.constant 0 : index
    %c0_46 = arith.constant 0 : index
    %139 = vector.load %arg8[%c0_44, %c0_45, %c0_46] : memref<1x32x32xbf16, #tpu.memory_space<vmem>>, vector<1x32x32xbf16>
    %140 = vector.shape_cast %139 : vector<1x32x32xbf16> to vector<32x32xbf16>
    %cst_47 = arith.constant dense<0.000000e+00> : vector<16x32xf32>
    %141 = tpu.matmul %138, %140, %cst_47 {dimension_numbers = #tpu.dot_dimension_numbers<[1], [0], [0], [1], [0, 0, 1, 1], [], []>} : vector<16x32xbf16>, vector<32x32xbf16>, vector<16x32xf32> -> vector<16x32xf32>
    %c0_48 = arith.constant 0 : index
    %c0_49 = arith.constant 0 : index
    %c0_50 = arith.constant 0 : index
    %142 = vector.load %arg9[%c0_48, %c0_49, %c0_50] : memref<1x1x32xf32, #tpu.memory_space<vmem>>, vector<1x1x32xf32>
    %143 = vector.shape_cast %142 : vector<1x1x32xf32> to vector<1x32xf32>
    %144 = vector.broadcast %143 : vector<1x32xf32> to vector<16x32xf32>
    %145 = arith.addf %141, %144 : vector<16x32xf32>
    %c0_51 = arith.constant 0 : index
    %c0_52 = arith.constant 0 : index
    %c0_53 = arith.constant 0 : index
    %146 = vector.load %arg10[%c0_51, %c0_52, %c0_53] : memref<1x32x32xbf16, #tpu.memory_space<vmem>>, vector<1x32x32xbf16>
    %147 = vector.shape_cast %146 : vector<1x32x32xbf16> to vector<32x32xbf16>
    %c0_54 = arith.constant 0 : index
    %c0_55 = arith.constant 0 : index
    %c0_56 = arith.constant 0 : index
    %148 = vector.load %arg11[%c0_54, %c0_55, %c0_56] : memref<1x1x32xf32, #tpu.memory_space<vmem>>, vector<1x1x32xf32>
    %149 = vector.shape_cast %148 : vector<1x1x32xf32> to vector<1x32xf32>
    %c0_57 = arith.constant 0 : index
    %c0_58 = arith.constant 0 : index
    %c0_59 = arith.constant 0 : index
    %150 = vector.load %arg12[%c0_57, %c0_58, %c0_59] : memref<1x32x32xbf16, #tpu.memory_space<vmem>>, vector<1x32x32xbf16>
    %151 = vector.shape_cast %150 : vector<1x32x32xbf16> to vector<32x32xbf16>
    %c0_60 = arith.constant 0 : index
    %c0_61 = arith.constant 0 : index
    %c0_62 = arith.constant 0 : index
    %152 = vector.load %arg13[%c0_60, %c0_61, %c0_62] : memref<1x1x32xf32, #tpu.memory_space<vmem>>, vector<1x1x32xf32>
    %153 = vector.shape_cast %152 : vector<1x1x32xf32> to vector<1x32xf32>
    %154 = arith.index_cast %arg0 : i32 to index
    %155 = memref.load %arg14[%154] : memref<2xf32, #tpu.memory_space<smem>>
    %156 = arith.truncf %145 : vector<16x32xf32> to vector<16x32xbf16>
    %cst_63 = arith.constant dense<0.000000e+00> : vector<16x32xf32>
    %157 = tpu.matmul %156, %147, %cst_63 {dimension_numbers = #tpu.dot_dimension_numbers<[1], [0], [0], [1], [0, 0, 1, 1], [], []>} : vector<16x32xbf16>, vector<32x32xbf16>, vector<16x32xf32> -> vector<16x32xf32>
    %158 = vector.broadcast %149 : vector<1x32xf32> to vector<16x32xf32>
    %159 = arith.addf %157, %158 : vector<16x32xf32>
    %cst_64 = arith.constant dense<0.000000e+00> : vector<16x32xf32>
    %160 = tpu.matmul %156, %151, %cst_64 {dimension_numbers = #tpu.dot_dimension_numbers<[1], [0], [0], [1], [0, 0, 1, 1], [], []>} : vector<16x32xbf16>, vector<32x32xbf16>, vector<16x32xf32> -> vector<16x32xf32>
    %161 = vector.broadcast %153 : vector<1x32xf32> to vector<16x32xf32>
    %162 = arith.addf %160, %161 : vector<16x32xf32>
    %163 = vector.broadcast %155 : f32 to vector<16x32xf32>
    %164 = arith.mulf %163, %159 : vector<16x32xf32>
    %165 = arith.negf %164 : vector<16x32xf32>
    %166 = math.exp %165 : vector<16x32xf32>
    %cst_65 = arith.constant 1.000000e+00 : f32
    %167 = vector.broadcast %cst_65 : f32 to vector<16x32xf32>
    %168 = arith.addf %167, %166 : vector<16x32xf32>
    %169 = arith.divf %167, %168 : vector<16x32xf32>
    %170 = arith.mulf %159, %169 : vector<16x32xf32>
    %171 = arith.mulf %170, %162 : vector<16x32xf32>
    %172 = vector.shape_cast %171 : vector<16x32xf32> to vector<2x8x32xf32>
    %173 = arith.addf %136, %172 : vector<2x8x32xf32>
    %c0_66 = arith.constant 0 : index
    %c0_67 = arith.constant 0 : index
    %c0_68 = arith.constant 0 : index
    %174 = vector.load %arg25[%c0_66, %c0_67, %c0_68] : memref<2x8x32xf32, #tpu.memory_space<vmem>>, vector<2x8x32xf32>
    tpu.vector_store %arg25[%c0_66, %c0_67, %c0_68], %173 {strides = array<i32>} : memref<2x8x32xf32, #tpu.memory_space<vmem>>, vector<2x8x32xf32>,
    %c1_i32_69 = arith.constant 1 : i32
    %175 = arith.cmpi eq, %arg0, %c1_i32_69 : i32
    %176 = arith.extui %175 : i1 to i32
    %c0_i32_70 = arith.constant 0 : i32
    %177 = arith.cmpi ne, %176, %c0_i32_70 : i32
    scf.if %177 {
      %178 = vector.shape_cast %173 : vector<2x8x32xf32> to vector<16x32xf32>
      %179 = arith.truncf %178 : vector<16x32xf32> to vector<16x32xbf16>
      %c0_71 = arith.constant 0 : index
      %c0_72 = arith.constant 0 : index
      %180 = vector.load %arg15[%c0_71, %c0_72] : memref<32x32xbf16, #tpu.memory_space<vmem>>, vector<32x32xbf16>
      %cst_73 = arith.constant dense<0.000000e+00> : vector<16x32xf32>
      %181 = tpu.matmul %179, %180, %cst_73 {dimension_numbers = #tpu.dot_dimension_numbers<[1], [0], [0], [1], [0, 0, 1, 1], [], []>} : vector<16x32xbf16>, vector<32x32xbf16>, vector<16x32xf32> -> vector<16x32xf32>
      %c0_74 = arith.constant 0 : index
      %c0_75 = arith.constant 0 : index
      %182 = vector.load %arg16[%c0_74, %c0_75] : memref<1x32xf32, #tpu.memory_space<vmem>>, vector<1x32xf32>
      %183 = vector.broadcast %182 : vector<1x32xf32> to vector<16x32xf32>
      %184 = arith.addf %181, %183 : vector<16x32xf32>
      %c0_76 = arith.constant 0 : index
      %c0_77 = arith.constant 0 : index
      %185 = vector.load %arg17[%c0_76, %c0_77] : memref<32x32xbf16, #tpu.memory_space<vmem>>, vector<32x32xbf16>
      %c0_78 = arith.constant 0 : index
      %c0_79 = arith.constant 0 : index
      %186 = vector.load %arg18[%c0_78, %c0_79] : memref<1x32xf32, #tpu.memory_space<vmem>>, vector<1x32xf32>
      %c0_80 = arith.constant 0 : index
      %c0_81 = arith.constant 0 : index
      %187 = vector.load %arg19[%c0_80, %c0_81] : memref<32x32xbf16, #tpu.memory_space<vmem>>, vector<32x32xbf16>
      %c0_82 = arith.constant 0 : index
      %c0_83 = arith.constant 0 : index
      %188 = vector.load %arg20[%c0_82, %c0_83] : memref<1x32xf32, #tpu.memory_space<vmem>>, vector<1x32xf32>
      %c0_84 = arith.constant 0 : index
      %189 = memref.load %arg23[%c0_84] : memref<1xf32, #tpu.memory_space<smem>>
      %190 = arith.truncf %184 : vector<16x32xf32> to vector<16x32xbf16>
      %cst_85 = arith.constant dense<0.000000e+00> : vector<16x32xf32>
      %191 = tpu.matmul %190, %185, %cst_85 {dimension_numbers = #tpu.dot_dimension_numbers<[1], [0], [0], [1], [0, 0, 1, 1], [], []>} : vector<16x32xbf16>, vector<32x32xbf16>, vector<16x32xf32> -> vector<16x32xf32>
      %192 = vector.broadcast %186 : vector<1x32xf32> to vector<16x32xf32>
      %193 = arith.addf %191, %192 : vector<16x32xf32>
      %cst_86 = arith.constant dense<0.000000e+00> : vector<16x32xf32>
      %194 = tpu.matmul %190, %187, %cst_86 {dimension_numbers = #tpu.dot_dimension_numbers<[1], [0], [0], [1], [0, 0, 1, 1], [], []>} : vector<16x32xbf16>, vector<32x32xbf16>, vector<16x32xf32> -> vector<16x32xf32>
      %195 = vector.broadcast %188 : vector<1x32xf32> to vector<16x32xf32>
      %196 = arith.addf %194, %195 : vector<16x32xf32>
      %197 = vector.broadcast %189 : f32 to vector<16x32xf32>
      %198 = arith.mulf %197, %193 : vector<16x32xf32>
      %199 = arith.negf %198 : vector<16x32xf32>
      %200 = math.exp %199 : vector<16x32xf32>
      %cst_87 = arith.constant 1.000000e+00 : f32
      %201 = vector.broadcast %cst_87 : f32 to vector<16x32xf32>
      %202 = arith.addf %201, %200 : vector<16x32xf32>
      %203 = arith.divf %201, %202 : vector<16x32xf32>
      %204 = arith.mulf %193, %203 : vector<16x32xf32>
      %205 = arith.mulf %204, %196 : vector<16x32xf32>
      %206 = arith.truncf %205 : vector<16x32xf32> to vector<16x32xbf16>
      %c0_88 = arith.constant 0 : index
      %c0_89 = arith.constant 0 : index
      %207 = vector.load %arg21[%c0_88, %c0_89] : memref<32x128xbf16, #tpu.memory_space<vmem>>, vector<32x128xbf16>
      %cst_90 = arith.constant dense<0.000000e+00> : vector<16x128xf32>
      %208 = tpu.matmul %206, %207, %cst_90 {dimension_numbers = #tpu.dot_dimension_numbers<[1], [0], [0], [1], [0, 0, 1, 1], [], []>} : vector<16x32xbf16>, vector<32x128xbf16>, vector<16x128xf32> -> vector<16x128xf32>
      %c0_91 = arith.constant 0 : index
      %c0_92 = arith.constant 0 : index
      %209 = vector.load %arg22[%c0_91, %c0_92] : memref<1x128xf32, #tpu.memory_space<vmem>>, vector<1x128xf32>
      %210 = vector.broadcast %209 : vector<1x128xf32> to vector<16x128xf32>
      %211 = arith.addf %208, %210 : vector<16x128xf32>
      %212 = vector.shape_cast %211 : vector<16x128xf32> to vector<2x8x128xf32>
      %c0_93 = arith.constant 0 : index
      %c0_94 = arith.constant 0 : index
      %c0_95 = arith.constant 0 : index
      %213 = vector.load %arg24[%c0_93, %c0_94, %c0_95] : memref<2x8x128xf32, #tpu.memory_space<vmem>>, vector<2x8x128xf32>
      tpu.vector_store %arg24[%c0_93, %c0_94, %c0_95], %212 {strides = array<i32>} : memref<2x8x128xf32, #tpu.memory_space<vmem>>, vector<2x8x128xf32>,
    } else {
    }
    return
  }
  func.func @transform_0(%arg0: i32) -> (i32, i32, i32) {
    %c0_i32 = arith.constant 0 : i32
    %c0_i32_0 = arith.constant 0 : i32
    %c0_i32_1 = arith.constant 0 : i32
    %c0_i32_2 = arith.constant 0 : i32
    return %c0_i32, %c0_i32_0, %c0_i32_1 : i32, i32, i32
  }
  func.func @transform_1(%arg0: i32) -> (i32, i32) {
    %c0_i32 = arith.constant 0 : i32
    %c0_i32_0 = arith.constant 0 : i32
    %c0_i32_1 = arith.constant 0 : i32
    return %c0_i32, %c0_i32_0 : i32, i32
  }
  func.func @transform_2(%arg0: i32) -> (i32, i32) {
    %c0_i32 = arith.constant 0 : i32
    %c0_i32_0 = arith.constant 0 : i32
    %c0_i32_1 = arith.constant 0 : i32
    return %c0_i32, %c0_i32_0 : i32, i32
  }
  func.func @transform_3(%arg0: i32) -> (i32, i32, i32) {
    %c0_i32 = arith.constant 0 : i32
    %c0_i32_0 = arith.constant 0 : i32
    %c0_i32_1 = arith.constant 0 : i32
    return %arg0, %c0_i32, %c0_i32_0 : i32, i32, i32
  }
  func.func @transform_4(%arg0: i32) -> (i32, i32, i32) {
    %c0_i32 = arith.constant 0 : i32
    %c0_i32_0 = arith.constant 0 : i32
    %c0_i32_1 = arith.constant 0 : i32
    return %arg0, %c0_i32, %c0_i32_0 : i32, i32, i32
  }
  func.func @transform_5(%arg0: i32) -> (i32, i32, i32) {
    %c0_i32 = arith.constant 0 : i32
    %c0_i32_0 = arith.constant 0 : i32
    %c0_i32_1 = arith.constant 0 : i32
    return %arg0, %c0_i32, %c0_i32_0 : i32, i32, i32
  }
  func.func @transform_6(%arg0: i32) -> (i32, i32, i32) {
    %c0_i32 = arith.constant 0 : i32
    %c0_i32_0 = arith.constant 0 : i32
    %c0_i32_1 = arith.constant 0 : i32
    return %arg0, %c0_i32, %c0_i32_0 : i32, i32, i32
  }
  func.func @transform_7(%arg0: i32) -> (i32, i32, i32) {
    %c0_i32 = arith.constant 0 : i32
    %c0_i32_0 = arith.constant 0 : i32
    %c0_i32_1 = arith.constant 0 : i32
    return %arg0, %c0_i32, %c0_i32_0 : i32, i32, i32
  }
  func.func @transform_8(%arg0: i32) -> (i32, i32, i32) {
    %c0_i32 = arith.constant 0 : i32
    %c0_i32_0 = arith.constant 0 : i32
    %c0_i32_1 = arith.constant 0 : i32
    return %arg0, %c0_i32, %c0_i32_0 : i32, i32, i32
  }
  func.func @transform_9(%arg0: i32) -> (i32, i32, i32) {
    %c0_i32 = arith.constant 0 : i32
    %c0_i32_0 = arith.constant 0 : i32
    %c0_i32_1 = arith.constant 0 : i32
    return %arg0, %c0_i32, %c0_i32_0 : i32, i32, i32
  }
  func.func @transform_10(%arg0: i32) -> (i32, i32, i32) {
    %c0_i32 = arith.constant 0 : i32
    %c0_i32_0 = arith.constant 0 : i32
    %c0_i32_1 = arith.constant 0 : i32
    return %arg0, %c0_i32, %c0_i32_0 : i32, i32, i32
  }
  func.func @transform_11(%arg0: i32) -> (i32, i32, i32) {
    %c0_i32 = arith.constant 0 : i32
    %c0_i32_0 = arith.constant 0 : i32
    %c0_i32_1 = arith.constant 0 : i32
    return %arg0, %c0_i32, %c0_i32_0 : i32, i32, i32
  }
  func.func @transform_12(%arg0: i32) -> (i32, i32, i32) {
    %c0_i32 = arith.constant 0 : i32
    %c0_i32_0 = arith.constant 0 : i32
    %c0_i32_1 = arith.constant 0 : i32
    return %arg0, %c0_i32, %c0_i32_0 : i32, i32, i32
  }
  func.func @transform_13(%arg0: i32) -> i32 {
    %c0_i32 = arith.constant 0 : i32
    %c0_i32_0 = arith.constant 0 : i32
    return %c0_i32 : i32
  }
  func.func @transform_14(%arg0: i32) -> (i32, i32) {
    %c0_i32 = arith.constant 0 : i32
    %c0_i32_0 = arith.constant 0 : i32
    %c0_i32_1 = arith.constant 0 : i32
    return %c0_i32, %c0_i32_0 : i32, i32
  }
  func.func @transform_15(%arg0: i32) -> (i32, i32) {
    %c0_i32 = arith.constant 0 : i32
    %c0_i32_0 = arith.constant 0 : i32
    %c0_i32_1 = arith.constant 0 : i32
    return %c0_i32, %c0_i32_0 : i32, i32
  }
  func.func @transform_16(%arg0: i32) -> (i32, i32) {
    %c0_i32 = arith.constant 0 : i32
    %c0_i32_0 = arith.constant 0 : i32
    %c0_i32_1 = arith.constant 0 : i32
    return %c0_i32, %c0_i32_0 : i32, i32
  }
  func.func @transform_17(%arg0: i32) -> (i32, i32) {
    %c0_i32 = arith.constant 0 : i32
    %c0_i32_0 = arith.constant 0 : i32
    %c0_i32_1 = arith.constant 0 : i32
    return %c0_i32, %c0_i32_0 : i32, i32
  }
  func.func @transform_18(%arg0: i32) -> (i32, i32) {
    %c0_i32 = arith.constant 0 : i32
    %c0_i32_0 = arith.constant 0 : i32
    %c0_i32_1 = arith.constant 0 : i32
    return %c0_i32, %c0_i32_0 : i32, i32
  }
  func.func @transform_19(%arg0: i32) -> (i32, i32) {
    %c0_i32 = arith.constant 0 : i32
    %c0_i32_0 = arith.constant 0 : i32
    %c0_i32_1 = arith.constant 0 : i32
    return %c0_i32, %c0_i32_0 : i32, i32
  }
  func.func @transform_20(%arg0: i32) -> (i32, i32) {
    %c0_i32 = arith.constant 0 : i32
    %c0_i32_0 = arith.constant 0 : i32
    %c0_i32_1 = arith.constant 0 : i32
    return %c0_i32, %c0_i32_0 : i32, i32
  }
  func.func @transform_21(%arg0: i32) -> (i32, i32) {
    %c0_i32 = arith.constant 0 : i32
    %c0_i32_0 = arith.constant 0 : i32
    %c0_i32_1 = arith.constant 0 : i32
    return %c0_i32, %c0_i32_0 : i32, i32
  }
  func.func @transform_22(%arg0: i32) -> i32 {
    %c0_i32 = arith.constant 0 : i32
    %c0_i32_0 = arith.constant 0 : i32
    return %c0_i32 : i32
  }
  func.func @transform_23(%arg0: i32) -> (i32, i32, i32) {
    %c0_i32 = arith.constant 0 : i32
    %c0_i32_0 = arith.constant 0 : i32
    %c0_i32_1 = arith.constant 0 : i32
    %c0_i32_2 = arith.constant 0 : i32
    return %c0_i32, %c0_i32_0, %c0_i32_1 : i32, i32, i32
  }
}

</mosaic_0001>

<bundles_post_ra>
// kernel: llama_forward.1
= control target key start
LH: loop header
LB: loop body
LE: loop exit
PB: predicated region body
PF: predicated region fallthrough
CT: control target
= control target key end

     0   :  { %s3194_s0 = inlined_call_operand.vmem [shape: f32[2,8,32], index: 0, kind: input, shape index: {}]   ;;  %s3195_s1 = inlined_call_operand.vmem [shape: f32[8,32], index: 1, kind: input, shape index: {}]   ;;  %s3196_s2 = inlined_call_operand.vmem [shape: f32[8,32], index: 2, kind: input, shape index: {}]   ;;  %s3197_s3 = inlined_call_operand.vmem [shape: f32[2,8,32], index: 3, kind: input, shape index: {}]   ;;  %s3198_s4 = inlined_call_operand.vmem [shape: bf16[2,32,192], index: 4, kind: input, shape index: {}]   ;;  %s3199_s5 = inlined_call_operand.vmem [shape: bf16[2,64,32], index: 5, kind: input, shape index: {}]   ;;  %s3200_s6 = inlined_call_operand.vmem [shape: f32[2,1,32], index: 6, kind: input, shape index: {}]   ;;  %s3201_s7 = inlined_call_operand.vmem [shape: bf16[2,32,32], index: 7, kind: input, shape index: {}]   ;;  %s3202_s8 = inlined_call_operand.vmem [shape: f32[2,1,32], index: 8, kind: input, shape index: {}]   ;;  %s3203_s9 = inlined_call_operand.vmem [shape: bf16[2,32,32], index: 9, kind: input, shape index: {}]   ;;  %s3204_s10 = inlined_call_operand.vmem [shape: f32[2,1,32], index: 10, kind: input, shape index: {}]   ;;  %s3205_s11 = inlined_call_operand.vmem [shape: bf16[2,32,32], index: 11, kind: input, shape index: {}]   ;;  %s3206_s12 = inlined_call_operand.vmem [shape: f32[2,1,32], index: 12, kind: input, shape index: {}]   ;;  %s3207_s13 = inlined_call_operand.vmem [shape: f32[2], index: 13, kind: input, shape index: {}]   ;;  %s3208_s14 = inlined_call_operand.vmem [shape: bf16[32,32], index: 14, kind: input, shape index: {}]   ;;  %s3209_s15 = inlined_call_operand.vmem [shape: f32[1,32], index: 15, kind: input, shape index: {}]   ;;  %s3210_s16 = inlined_call_operand.vmem [shape: bf16[32,32], index: 16, kind: input, shape index: {}]   ;;  %s3211_s17 = inlined_call_operand.vmem [shape: f32[1,32], index: 17, kind: input, shape index: {}]   ;;  %s3212_s18 = inlined_call_operand.vmem [shape: bf16[32,32], index: 18, kind: input, shape index: {}]   ;;  %s3213_s19 = inlined_call_operand.vmem [shape: f32[1,32], index: 19, kind: input, shape index: {}]   ;;  %s3214_s20 = inlined_call_operand.vmem [shape: bf16[32,128], index: 20, kind: input, shape index: {}]   ;;  %s3215_s21 = inlined_call_operand.vmem [shape: f32[1,128], index: 21, kind: input, shape index: {}]   ;;  %s3216_s22 = inlined_call_operand.<no memory space> [shape: f32[1], index: 22, kind: input, shape index: {}]   ;;  %s3217_s23 = inlined_call_operand.hbm [shape: f32[2,8,128], index: 23, kind: output, shape index: {}]  }
   0x1   :  { %3222 = sst [smem:[#allocation11_spill]] %s3194_s0 }
   0x2   :  { %3223 = sst [smem:[#allocation12_spill]] %s3195_s1 }
   0x3   :  { %3224 = sst [smem:[#allocation13_spill]] %s3196_s2 }
   0x4   :  { %3225 = sst [smem:[#allocation14_spill]] %s3197_s3 }
   0x5   :  { %3226 = sst [smem:[#allocation15_spill]] %s3198_s4 }
   0x6   :  { %3227 = sst [smem:[#allocation16_spill]] %s3199_s5 }
   0x7   :  { %3228 = sst [smem:[#allocation17_spill]] %s3200_s6 }
   0x8   :  { %3229 = sst [smem:[#allocation18_spill]] %s3201_s7 }
   0x9   :  { %3230 = sst [smem:[#allocation19_spill]] %s3207_s13 }
   0xa   :  { %3231 = sst [smem:[#allocation20_spill]] %s3209_s15 }
   0xb   :  { %3232 = sst [smem:[#allocation21_spill]] %s3211_s17 }
   0xc   :  { %3233 = sst [smem:[#allocation22_spill]] %s3213_s19 }
   0xd   :  { %3234 = sst [smem:[#allocation23_spill]] %s3214_s20 }
   0xe   :  { %3235 = sst [smem:[#allocation24_spill]] %s3215_s21 }
   0xf   :  { %3236 = sst [smem:[#allocation25_spill]] %s3217_s23 }
  0x10   :  { %28 = sst [smem:[#allocation3]] %s3216_s22 }
  0x11   :  { %29 = vsyncpa [#allocation6], 0 }
  0x12   :  { %30 = vsyncpa [#allocation5], 0  ;;  %s2828_s24 = smov 0  }
  0x13 LB: > { %3237 = sst [smem:[#allocation10_spill]] %s2689_s24  ;;  %s2834_s25 = sadd.s32 4294967295, %s2689_s24   ;;  %s2689_s24 = sphi %s2828_s24, %s36_s24  }
  0x14   : > { %p2291_p0 = scmp.ge.s32.totalorder %s2689_s24, 1  ;;  %p595_p1 = scmp.lt.s32.totalorder %s2689_s24, 3 }
  0x15   : > { %s3238_s13 = sld [smem:[#allocation19_spill]]  ;;  %p2539_p4 = scmp.eq.s32.totalorder %s2834_s25, 0 }
  0x16   : > { %p2842_p3 = pnand %p2291_p0, %p595_p1 }
  0x18   : > { %p2535_p5 = pneg %p2842_p3 }
  0x1a   : > { %p2536_p6 = pnand %p2539_p4, %p2535_p5 }
  0x1b   : > { %s617_s1 = sshll.u32 %s3238_s13, 4  ;;  %s618_s1 = int_to_ptr.vmem [resolvable:$true] %s617_s1 }
  0x1c   : > { %s2634_s2 = scalar_lea.vmem %s618_s1, 16  ;;  %p2636_p8 = pneg %p2536_p6 }
  0x1d   : > { %p2635_p7 = scmp.ne.s32.totalorder %s618_s1, %s2634_s2  ;;  %p2642_p11 = scmp.lt.s32.totalorder %s618_s1, %s618_s1 }
  0x1e   : > { %p2643_p12 = scmp.lt.s32.totalorder %s2634_s2, %s2634_s2 }
  0x1f   : > { %p2637_p9 = pnand %p2636_p8, %p2635_p7 }
  0x20   : > { %p2644_p13 = por %p2643_p12, %p2642_p11 }
  0x21   : > { %p2638_p10 = pneg %p2637_p9 }
  0x23   : > { %p2645_p2 = pnand %p2644_p13, %p2638_p10 }
  0x25   : > { %2648 = shalt.err (!%p2645_p2)
}
  0x26   : > { %s2691_s6 = smov [#allocation4]   ;;  %728 = sbr.rel (%p2842_p3) target bundleno = 3392 (0xd40), region = 112 }
  0x27   : > { %2538 = dma.vmem_to_smem (!%p2536_p6), %s618_s1, 16, %s2691_s6, [#allocation6]  }
  0x2d   : > { %2680 = dma.done.wait (%p2539_p4), [#allocation6], 16  }
  0x2e   : > { %2682 = vsyncadd (%p2539_p4), [#allocation6], 4294967280 }
  0x2f   : > { %734 = sfence }
  0x30   : > { %p824_p0 = scmp.lt.s32.totalorder %s2834_s25, 1  ;;  %s3240_s0 = sld [smem:[#allocation14_spill]] }
  0x31   : > { %s3241_s5 = sld [smem:[#allocation15_spill]]  ;;  %s3242_s6 = sld [smem:[#allocation16_spill]] }
  0x32   : > { %s2859_s27 = scalar_select %p824_p0, %s2834_s25, 1 }
  0x33   : > { %s3243_s21 = sld [smem:[#allocation17_spill]]  ;;  %p3245_p1 = scmp.ne.s32.totalorder %s2834_s25, 0 }
  0x34   : > { %s2296_s7 = sshll.u32 %s2859_s27, 3  ;;  %s2364_s28 = sshll.u32 %s2859_s27, 5  ;;  %vm872_vm0 = vcmask (!%p3245_p1), 261120  }
  0x35   : > { %s2366_s17 = sshll.u32 %s2859_s27, 4  ;;  %s856_s23 = scalar_lea.vmem %s3204_s10, %s2859_s27 }
  0x36   : > { %s2866_s4 = scalar_lea.vmem %s3240_s0, %s2296_s7  ;;  %s848_s7 = scalar_lea.vmem %s3202_s8, %s2859_s27 }
  0x37   : > { %s2871_s1 = scalar_lea.vmem %s3241_s5, %s2364_s28  ;;  %s2876_s13 = scalar_lea.vmem %s3242_s6, %s2364_s28 }
  0x38   : > { %s3244_s0 = sld [smem:[#allocation18_spill]]  ;;  %s2895_s26 = scalar_lea.vmem %s3203_s9, %s2366_s17 }
  0x39   : > { %s840_s19 = scalar_lea.vmem %s3243_s21, %s2859_s27  ;;  %s2904_s6 = scalar_lea.vmem %s3205_s11, %s2366_s17 }
  0x3a   : > { %s864_s29 = scalar_lea.vmem %s3206_s12, %s2859_s27  ;;  %869 = sbr.rel (%p3245_p1) target bundleno = 67 (0x43), region = 120 }
  0x3b   : > { %s3246_s22 = sld [smem:[#allocation11_spill]] (!%p3245_p1) }
  0x3e   : > { %s2890_s30 = scalar_lea.vmem %s3244_s0, %s2366_s17 }
  0x41   : > { %v870_v0 = vld [vmem:[%s3246_s22] sm:$0xff]  ;;  %v871_v1 = vld [vmem:[%s3246_s22 + $0x8] sm:$0xff] }
  0x42   : > { %873 = vst.msk [vmem:[#allocation2] sm:$0xff] %vm872_vm0, %v870_v0  ;;  %874 = vst.msk [vmem:[#allocation2 + $0x8] sm:$0xff] %vm872_vm0, %v871_v1 }
  0x43 PF: > { %vm880_vm1 = vcmask 261120   ;;  %v2570_v8 = vld [vmem:[%s2871_s1 + $0x4] ss:$8 sps:$4 sm:$0xff]   ;;  %v2572_v9 = vld [vmem:[%s2871_s1] ss:$8 sps:$4 sm:$0xff]   ;;  %v2692_v12 = vmov 0   ;;  %v1014_v48 = vlaneseq }
  0x44   : > { %935 = vmatprep.subr.bf16.mxu0 %v2570_v8  ;;  %v2573_v10 = vld [vmem:[%s2871_s1 + $0x14] ss:$8 sps:$4 sm:$0xff]   ;;  %v2575_v11 = vld [vmem:[%s2871_s1 + $0x10] ss:$8 sps:$4 sm:$0xff]   ;;  %967 = vmatprep.mubr.bf16.mxu0 %v2692_v12  ;;  %s3247_s21 = sld [smem:[#allocation12_spill]]  ;;  %s3248_s20 = sld [smem:[#allocation13_spill]] }
  0x45   : > { %936 = vmatpush1.bf16.msra.mxu0 %v2572_v9  ;;  %s2693_s3 = smov 64   ;;  %s2694_s0 = smov 32   ;;  %v2937_v36 = vld [vmem:[%s2866_s4] sm:$0xff]  ;;  %v2948_v50 = vand.u32 127, %v1014_v48  ;;  %vm993_vm2 = vcmask 523264   ;;  %v2698_v56 = vmov 0.0  }
  0x46   : > { %937 = vmatprep.subr.bf16.mxu0 %v2573_v10  ;;  %s2695_s1 = smov 96   ;;  %s2696_s5 = smov 127   ;;  %2411 = vmatprep.subr.bf16.mxu1 %v2698_v56  ;;  %vm995_vm3 = vcmask 785408   ;;  %vm2699_vm5 = vmmov 0   ;;  %vm1174_vm6 = vcmask 1043456   ;;  %vm1150_vm8 = vcmask 64512  }
  0x47   : > { %s2697_s28 = smov 1   ;;  %v1028_v52 = vand.u32 1, %v2948_v50  ;;  %2413 = vmatprep.mubr.msk.bf16.mxu1 %vm2699_vm5, %v2698_v56  ;;  %p2341_p2 = scmp.ne.s32.totalorder %s2834_s25, 1 }
  0x48   : > { %vm2701_vm9 = vmmov (!%p2341_p2), 0  }
  0x49   : > { %v875_v2 = vld [vmem:[#allocation2] sm:$0xff]  ;;  %v876_v3 = vld [vmem:[#allocation2 + $0x8] sm:$0xff]  ;;  %938 = vmatpush1.bf16.msra.mxu0 %v2575_v11  ;;  %vm2957_vm4 = vcmp.eq.s32.totalorder %v1028_v52, 0 }
  0x4a   : > { %v878_v4 = vmul.f32 %v875_v2, %v875_v2  ;;  %v879_v5 = vmul.f32 %v876_v3, %v876_v3  ;;  %v978_v13 = vld [vmem:[%s3247_s21] sm:$0xff]  ;;  %2417 = vmatprep.subr.bf16.mxu0 %v2698_v56 }
  0x4b   : > { %v979_v14 = vld [vmem:[%s3248_s20] sm:$0xff]  ;;  %v980_v15 = vmul.f32 0.17677669, %v978_v13  ;;  %s3255_s20 = sld [smem:[#allocation22_spill]] (!%p2341_p2) }
  0x4c   : > { %v881_v6 = vsel %vm880_vm1, %v878_v4, 0.0  ;;  %v884_v7 = vsel %vm880_vm1, %v879_v5, 0.0  ;;  %v997_v16 = vmul.f32 0.17677669, %v979_v14 }
  0x4d   : > { %882 = vadd.xlane.f32.xlu0 %v881_v6  ;;  %982 = vrot.lane.b32.xlu1 %v980_v15, %s2694_s0 }
  0x51   : > { %885 = vadd.xlane.f32.xlu0 %v884_v7  ;;  %999 = vrot.lane.b32.xlu1 %v997_v16, %s2694_s0 }
  0x55   : > { %1003 = vrot.lane.b32.xlu1 %v979_v14, %s2693_s3 }
  0x59   : > { %989 = vrot.lane.b32.xlu1 %v978_v13, %s2695_s1 }
  0x5d   : > { %1006 = vrot.lane.b32.xlu1 %v979_v14, %s2695_s1 }
  0x67   : > { %986 = vrot.lane.b32.xlu0 %v978_v13, %s2693_s3 }
  0xbf   : > { %v983_v45 = vpop.permute.xlu1 %982 }
  0xc0   : > { %v992_v53 = vsel %vm880_vm1, %v980_v15, %v983_v45 }
  0xc3   : > { %v1000_v46 = vpop.permute.xlu1 %999 }
  0xc4   : > { %v1009_v54 = vsel %vm880_vm1, %v997_v16, %v1000_v46 }
  0xc7   : > { %v1004_v47 = vpop.permute.xlu1 %1003 }
  0xc8   : > { %v1010_v58 = vsel %vm993_vm2, %v1009_v54, %v1004_v47 }
  0xcb   : > { %v990_v49 = vpop.permute.xlu1 %989 }
  0xcf   : > { %v1007_v51 = vpop.permute.xlu1 %1006 }
  0xd0   : > { %v1011_v0 = vsel %vm995_vm3, %v1010_v58, %v1007_v51 }
  0xda   : > { %v883_v17 = vpop.xlane.xlu0 %882 }
  0xdb   : > { %v887_v18 = vrot.slane %v883_v17, 4 }
  0xdd   : > { %v888_v19 = vadd.f32 %v887_v18, %v883_v17 }
  0xde   : > { %v886_v20 = vpop.xlane.xlu0 %885 }
  0xdf   : > { %v889_v21 = vrot.slane %v888_v19, 2  ;;  %v893_v22 = vrot.slane %v886_v20, 4 }
  0xe1   : > { %v890_v23 = vadd.f32 %v889_v21, %v888_v19  ;;  %v894_v24 = vadd.f32 %v893_v22, %v886_v20  ;;  %v2991_v20 = vshrl.u32 %v1014_v48, 7 }
  0xe2   : > { %v987_v55 = vpop.permute.xlu0 %986 }
  0xe3   : > { %v891_v25 = vrot.slane %v890_v23, 1  ;;  %v895_v26 = vrot.slane %v894_v24, 2  ;;  %v994_v59 = vsel %vm993_vm2, %v992_v53, %v987_v55  ;;  %vm1045_vm7 = vcmp.le.s32.totalorder %v2948_v50, %v2991_v20 }
  0xe4   : > { %v996_v63 = vsel %vm995_vm3, %v994_v59, %v990_v49 }
  0xe5   : > { %v892_v27 = vadd.f32 %v891_v25, %v890_v23  ;;  %v896_v28 = vadd.f32 %v895_v26, %v894_v24 }
  0xe7   : > { %2586 = vrsqrt.f32 %v892_v27  ;;  %v897_v29 = vrot.slane %v896_v28, 1 }
  0xe9   : > { %v898_v30 = vadd.f32 %v897_v29, %v896_v28 }
  0xeb   : > { %2588 = vrsqrt.f32 %v898_v30 }
  0xf1   : > { %v2587_v31 = vpop.eup %2586 }
  0xf2   : > { %v901_v32 = vmul.f32 16.0, %v2587_v31 }
  0xf4   : > { %v903_v34 = vmul.f32 %v901_v32, %v875_v2 }
  0xf5   : > { %v2589_v33 = vpop.eup %2588 }
  0xf6   : > { %v902_v35 = vmul.f32 16.0, %v2589_v33  ;;  %v2940_v38 = vmul.f32 %v903_v34, %v2937_v36 }
  0xf8   : > { %v904_v37 = vmul.f32 %v902_v35, %v876_v3 }
  0xfa   : > { %v2943_v39 = vmul.f32 %v904_v37, %v2937_v36 }
  0xfc   : > { %v907_v40 = vpack.c.bf16 %v2943_v39, %v2940_v38 }
  0xfe   : > { %2312 = vmatmul.mubr.msk.bf16.vlgmr.msra.gmra.mrb[0].mxu0 %vm880_vm1, %v907_v40 }
  0xff   : > { %2419 = vmatprep.mubr.msk.bf16.mxu0 %vm2699_vm5, %v2698_v56 }
 0x1d1   : > { %v969_v41 = vpop.f32.mrb[0].mxu0 }
 0x1d2   : > { %1016 = vrot.lane.b32.xlu1 %v969_v41, %s2696_s5  ;;  %v971_v42 = vpop.f32.mrb[1].mxu0  ;;  %v1012_v7 = vmul.f32 %v996_v63, %v969_v41 }
 0x1d3   : > { %v973_v43 = vpop.f32.mrb[2].mxu0  ;;  %v2977_v17 = vpack.c.bf16 %v971_v42, %v971_v42 }
 0x1d4   : > { %1022 = vrot.lane.b32.xlu0 %v973_v43, %s2697_s28  ;;  %v975_v44 = vpop.f32.mrb[3].mxu0  ;;  %v1013_v2 = vmul.f32 %v996_v63, %v973_v43 }
 0x1d5   : > { %v2973_v15 = vpack.c.bf16 %v975_v44, %v975_v44  ;;  %v1176_v19 = vsel %vm1174_vm6, %v2977_v17, 0 }
 0x1d6   : > { %1018 = vrot.lane.b32.xlu1 %v973_v43, %s2696_s5 }
 0x1d7   : > { %v1222_v18 = vsel %vm1174_vm6, %v2973_v15, 0 }
 0x1da   : > { %1020 = vrot.lane.b32.xlu1 %v969_v41, %s2697_s28 }
 0x244   : > { %v1017_v57 = vpop.permute.xlu1 %1016 }
 0x246   : > { %v1023_v61 = vpop.permute.xlu0 %1022 }
 0x248   : > { %v1019_v62 = vpop.permute.xlu1 %1018 }
 0x249   : > { %v1038_v1 = vsel %vm2957_vm4, %v1019_v62, %v1023_v61 }
 0x24a   : > { %v1040_v3 = vmul.f32 %v1038_v1, %v1011_v0 }
 0x24c   : > { %v1042_v4 = vadd.f32 %v1040_v3, %v1013_v2  ;;  %v1021_v5 = vpop.permute.xlu1 %1020 }
 0x24d   : > { %v1037_v6 = vsel %vm2957_vm4, %v1017_v57, %v1021_v5 }
 0x24e   : > { %v1047_v8 = vpack.c.bf16 %v1042_v4, %v1042_v4  ;;  %v1039_v9 = vmul.f32 %v1037_v6, %v1011_v0 }
 0x250   : > { %v1041_v10 = vadd.f32 %v1039_v9, %v1012_v7  ;;  %1100 = vrot.lane.b32.xlu0 %v1047_v8, %s2693_s3 }
 0x252   : > { %v1046_v11 = vpack.c.bf16 %v1041_v10, %v1041_v10 }
 0x254   : > { %1051 = vrot.lane.b32.xlu1 %v1046_v11, %s2693_s3 }
 0x2c2   : > { %v1101_v12 = vpop.permute.xlu0 %1100 }
 0x2c3   : > { %v1106_v13 = vsel %vm880_vm1, %v1101_v12, 0 }
 0x2c4   : > { %2418 = vmatpush3.bf16.xpose.msra.mxu0 %v1106_v13 }
 0x2c5   : > { %2429 = vmatprep.subr.bf16.mxu0 %v2698_v56 }
 0x2c6   : > { %v1052_v14 = vpop.permute.xlu1 %1051 }
 0x2c7   : > { %v1057_v16 = vsel %vm880_vm1, %v1052_v14, 0 }
 0x2c8   : > { %2412 = vmatpush3.bf16.xpose.msra.mxu1 %v1057_v16 }
 0x2c9   : > { %2423 = vmatprep.subr.bf16.mxu1 %v2698_v56 }
 0x2cb   : > { %2420 = vmatmul.mubr.msk.bf16.vlgmr.msra.gmra.mrb[4].mxu0 %vm880_vm1, %v1047_v8 }
 0x2cc   : > { %2430 = vmatpush3.bf16.msra.mxu0 %v1222_v18  ;;  %2431 = vmatprep.mubr.msk.bf16.mxu0 %vm2699_vm5, %v2698_v56 }
 0x2cd   : > { %2441 = vmatprep.subr.bf16.mxu0 %v2698_v56 }
 0x2cf   : > { %2414 = vmatmul.mubr.msk.bf16.vlgmr.msra.gmra.mrb[0].mxu1 %vm880_vm1, %v1046_v11 }
 0x2d0   : > { %2424 = vmatpush3.bf16.msra.mxu1 %v1176_v19  ;;  %2425 = vmatprep.mubr.msk.bf16.mxu1 %vm2699_vm5, %v2698_v56 }
 0x2d1   : > { %2435 = vmatprep.subr.bf16.mxu1 %v2698_v56 }
 0x39e   : > { %v1142_v21 = vpop.f32.mrb[4].mxu0 }
 0x39f   : > { %v1149_v22 = vsel %vm1045_vm7, %v1142_v21, -1e+30  ;;  %v2421_v23 = vpop.f32.mrb[5].mxu0 }
 0x3a0   : > { %v1145_v24 = vpop.f32.mrb[6].mxu0  ;;  %v1154_v25 = vsel %vm1150_vm8, %v1149_v22, -inf }
 0x3a1   : > { %1155 = vmax.xlane.f32.xlu0 %v1154_v25  ;;  %v2422_v26 = vpop.f32.mrb[7].mxu0 }
 0x3a2   : > { %v1093_v27 = vpop.f32.mrb[0].mxu1 }
 0x3a3   : > { %v1148_v28 = vsel %vm1045_vm7, %v1093_v27, -1e+30  ;;  %v2415_v29 = vpop.f32.mrb[1].mxu1  ;;  %v2576_v27 = vld [vmem:[%s2876_s13] sm:$0xff]  }
 0x3a4   : > { %v1096_v30 = vpop.f32.mrb[2].mxu1  ;;  %v1151_v31 = vsel %vm1150_vm8, %v1148_v28, -inf  ;;  %v2578_v29 = vld [vmem:[%s2876_s13 + $0x10] sm:$0xff]  }
 0x3a5   : > { %1152 = vmax.xlane.f32.xlu1 %v1151_v31  ;;  %v2416_v32 = vpop.f32.mrb[3].mxu1 }
 0x3a6   : > { %v2579_v32 = vld [vmem:[%s2876_s13 + $0x18] sm:$0xff]  }
 0x3b6   : > { %1320 = vrot.lane.b32.xlu1 %v1047_v8, %s2694_s0 }
 0x3b7   : > { %1270 = vrot.lane.b32.xlu0 %v1046_v11, %s2694_s0 }
 0x3ba   : > { %1268 = vrot.lane.b32.xlu1 %v1046_v11, %s2695_s1 }
 0x3bb   : > { %1318 = vrot.lane.b32.xlu0 %v1047_v8, %s2695_s1 }
 0x42e   : > { %v1156_v33 = vpop.xlane.xlu0 %1155 }
 0x42f   : > { %v1158_v34 = vsub.f32 %v1149_v22, %v1156_v33 }
 0x431   : > { %v1161_v35 = vmul.f32 1.442695, %v1158_v34 }
 0x432   : > { %v1153_v37 = vpop.xlane.xlu1 %1152  ;;  %v1271_v47 = vpop.permute.xlu0 %1270 }
 0x433   : > { %2590 = vpow2.f32 %v1161_v35  ;;  %v1157_v40 = vsub.f32 %v1148_v28, %v1153_v37  ;;  %v1276_v49 = vsel %vm880_vm1, %v1271_v47, 0  ;;  %v2577_v28 = vld [vmem:[%s2876_s13 + $0x8] sm:$0xff]  }
 0x435   : > { %v1159_v41 = vmul.f32 1.442695, %v1157_v40 }
 0x436   : > { %v1321_v43 = vpop.permute.xlu1 %1320  ;;  %v1319_v51 = vpop.permute.xlu0 %1318 }
 0x437   : > { %2592 = vpow2.f32 %v1159_v41  ;;  %v1326_v45 = vsel %vm880_vm1, %v1321_v43, 0 }
 0x43a   : > { %v1269_v52 = vpop.permute.xlu1 %1268 }
 0x43d   : > { %v3007_v42 = vpop.eup %2590 }
 0x43e   : > { %v1170_v44 = vpack.c.bf16 %v3007_v42, %v3007_v42  ;;  %v1166_v26 = vsel %vm1150_vm8, %v3007_v42, 0.0 }
 0x440   : > { %2432 = vmatmul.mubr.msk.bf16.vlgmr.msra.gmra.mrb[8].mxu0 %vm1150_vm8, %v1170_v44 }
 0x441   : > { %v3013_v46 = vpop.eup %2592  ;;  %2442 = vmatpush3.bf16.xpose.msra.mxu0 %v1326_v45  ;;  %2443 = vmatprep.mubr.msk.bf16.mxu0 %vm2699_vm5, %v2698_v56 }
 0x442   : > { %v1169_v48 = vpack.c.bf16 %v3013_v46, %v3013_v46  ;;  %2453 = vmatprep.subr.bf16.mxu0 %v2698_v56  ;;  %v1163_v24 = vsel %vm1150_vm8, %v3013_v46, 0.0 }
 0x444   : > { %2426 = vmatmul.mubr.msk.bf16.vlgmr.msra.gmra.mrb[4].mxu1 %vm1150_vm8, %v1169_v48 }
 0x445   : > { %2436 = vmatpush3.bf16.xpose.msra.mxu1 %v1276_v49  ;;  %2437 = vmatprep.mubr.msk.bf16.mxu1 %vm2699_vm5, %v2698_v56 }
 0x446   : > { %2447 = vmatprep.subr.bf16.mxu1 %v2698_v56 }
 0x448   : > { %2444 = vmatmul.mubr.msk.bf16.vlgmr.msra.gmra.mrb[12].mxu0 %vm880_vm1, %v1319_v51 }
 0x449   : > { %2455 = vmatprep.mubr.msk.bf16.mxu0 %vm2699_vm5, %v2698_v56 }
 0x44c   : > { %2438 = vmatmul.mubr.msk.bf16.vlgmr.msra.gmra.mrb[8].mxu1 %vm880_vm1, %v1269_v52 }
 0x44d   : > { %2449 = vmatprep.mubr.msk.bf16.mxu1 %vm2699_vm5, %v2698_v56 }
 0x513   : > { %v3031_v53 = vpop.f32.mrb[8].mxu0 }
 0x514   : > { %v2433_v54 = vpop.f32.mrb[9].mxu0 }
 0x515   : > { %v1261_v55 = vpop.f32.mrb[10].mxu0 }
 0x516   : > { %v2434_v57 = vpop.f32.mrb[11].mxu0 }
 0x517   : > { %v3033_v58 = vpop.f32.mrb[4].mxu1 }
 0x518   : > { %v2427_v59 = vpop.f32.mrb[5].mxu1 }
 0x519   : > { %v1215_v60 = vpop.f32.mrb[6].mxu1 }
 0x51a   : > { %v2428_v61 = vpop.f32.mrb[7].mxu1 }
 0x51b   : > { %v1362_v62 = vpop.f32.mrb[12].mxu0 }
 0x51c   : > { %v1369_v63 = vsel %vm1045_vm7, %v1362_v62, -1e+30  ;;  %v2445_v0 = vpop.f32.mrb[13].mxu0 }
 0x51d   : > { %v1365_v1 = vpop.f32.mrb[14].mxu0  ;;  %v1373_v2 = vsel %vm1150_vm8, %v1369_v63, -inf }
 0x51e   : > { %1374 = vmax.xlane.f32.xlu0 %v1373_v2  ;;  %v2446_v3 = vpop.f32.mrb[15].mxu0 }
 0x51f   : > { %v1312_v4 = vpop.f32.mrb[8].mxu1 }
 0x520   : > { %v1368_v5 = vsel %vm1045_vm7, %v1312_v4, -1e+30  ;;  %v2439_v6 = vpop.f32.mrb[9].mxu1 }
 0x521   : > { %v1315_v7 = vpop.f32.mrb[10].mxu1  ;;  %v1370_v8 = vsel %vm1150_vm8, %v1368_v5, -inf }
 0x522   : > { %1371 = vmax.xlane.f32.xlu1 %v1370_v8  ;;  %v2440_v9 = vpop.f32.mrb[11].mxu1 }
 0x533   : > { %1440 = vrot.lane.b32.xlu1 %v2973_v15, %s2695_s1 }
 0x534   : > { %1391 = vrot.lane.b32.xlu0 %v2977_v17, %s2695_s1  ;;  %s3256_s1 = sld [smem:[#allocation24_spill]] (!%p2341_p2) }
 0x5ab   : > { %v1375_v10 = vpop.xlane.xlu0 %1374 }
 0x5ac   : > { %v1377_v11 = vsub.f32 %v1369_v63, %v1375_v10 }
 0x5ae   : > { %v1380_v12 = vmul.f32 1.442695, %v1377_v11 }
 0x5af   : > { %v1372_v13 = vpop.xlane.xlu1 %1371  ;;  %v1392_v14 = vpop.permute.xlu0 %1391 }
 0x5b0   : > { %2594 = vpow2.f32 %v1380_v12  ;;  %v1376_v50 = vsub.f32 %v1368_v5, %v1372_v13  ;;  %v1397_v16 = vsel %vm1174_vm6, %v1392_v14, 0  ;;  %v2580_v12 = vld [vmem:[%s2890_s30] sm:$0xff]   ;;  %v2581_v13 = vld [vmem:[%s2890_s30 + $0x8] sm:$0xff]  }
 0x5b1   : > { %2448 = vmatpush3.bf16.msra.mxu1 %v1397_v16 }
 0x5b2   : > { %v1378_v18 = vmul.f32 1.442695, %v1376_v50  ;;  %2459 = vmatprep.subr.bf16.mxu1 %v2698_v56 }
 0x5b3   : > { %v1441_v19 = vpop.permute.xlu1 %1440 }
 0x5b4   : > { %2596 = vpow2.f32 %v1378_v18  ;;  %v1446_v15 = vsel %vm1174_vm6, %v1441_v19, 0 }
 0x5b5   : > { %2454 = vmatpush3.bf16.msra.mxu0 %v1446_v15 }
 0x5b6   : > { %2471 = vmatprep.subr.bf16.mxu0 %v2698_v56 }
 0x5ba   : > { %v2595_v17 = vpop.eup %2594 }
 0x5bb   : > { %v1385_v20 = vsel %vm1150_vm8, %v2595_v17, 0.0  ;;  %v1389_v21 = vpack.c.bf16 %v2595_v17, %v2595_v17 }
 0x5bc   : > { %1386 = vadd.xlane.f32.xlu0 %v1385_v20 }
 0x5bd   : > { %2456 = vmatmul.mubr.msk.bf16.vlgmr.msra.gmra.mrb[16].mxu0 %vm1150_vm8, %v1389_v21 }
 0x5be   : > { %v2597_v22 = vpop.eup %2596  ;;  %2475 = vmatprep.mubr.msk.bf16.mxu0 %vm2699_vm5, %v2698_v56  ;;  %2472 = vmatpush3.bf16.msra.mxu0 %v2580_v12 }
 0x5bf   : > { %v1382_v23 = vsel %vm1150_vm8, %v2597_v22, 0.0  ;;  %v1388_v25 = vpack.c.bf16 %v2597_v22, %v2597_v22  ;;  %2473 = vmatprep.subr.bf16.mxu0 %v2698_v56 }
 0x5c0   : > { %1383 = vadd.xlane.f32.xlu1 %v1382_v23  ;;  %1164 = vadd.xlane.f32.xlu0 %v1163_v24 }
 0x5c1   : > { %2450 = vmatmul.mubr.msk.bf16.vlgmr.msra.gmra.mrb[12].mxu1 %vm1150_vm8, %v1388_v25 }
 0x5c2   : > { %2467 = vmatprep.mubr.msk.bf16.mxu1 %vm2699_vm5, %v2698_v56  ;;  %2460 = vmatpush3.bf16.msra.mxu1 %v2576_v27 }
 0x5c3   : > { %2461 = vmatprep.subr.bf16.mxu1 %v2698_v56  ;;  %2474 = vmatpush3.bf16.msra.mxu0 %v2581_v13 }
 0x5c4   : > { %1167 = vadd.xlane.f32.xlu1 %v1166_v26  ;;  %2479 = vmatprep.subr.bf16.mxu0 %v2698_v56 }
 0x5c6   : > { %2462 = vmatpush3.bf16.msra.mxu1 %v2577_v28 }
 0x5c7   : > { %2463 = vmatprep.subr.bf16.mxu1 %v2698_v56 }
 0x5ca   : > { %2464 = vmatpush3.bf16.msra.mxu1 %v2578_v29 }
 0x5cb   : > { %2465 = vmatprep.subr.bf16.mxu1 %v2698_v56 }
 0x5ce   : > { %2466 = vmatpush3.bf16.msra.mxu1 %v2579_v32 }
 0x5cf   : > { %2487 = vmatprep.subr.bf16.mxu1 %v2698_v56 }
 0x649   : > { %v1387_v30 = vpop.xlane.xlu0 %1386 }
 0x64a   : > { %2598 = vrcp.f32 %v1387_v30 }
 0x64d   : > { %v1384_v31 = vpop.xlane.xlu1 %1383  ;;  %v1165_v49 = vpop.xlane.xlu0 %1164 }
 0x64e   : > { %2600 = vrcp.f32 %v1384_v31 }
 0x64f   : > { %2602 = vrcp.f32 %v1165_v49 }
 0x651   : > { %v1168_v51 = vpop.xlane.xlu1 %1167 }
 0x652   : > { %2604 = vrcp.f32 %v1168_v51 }
 0x654   : > { %v2599_v37 = vpop.eup %2598 }
 0x658   : > { %v2601_v41 = vpop.eup %2600 }
 0x659   : > { %v2603_v52 = vpop.eup %2602 }
 0x65a   : > { %v1266_v57 = vmul.f32 %v2603_v52, %v3033_v58  ;;  %v2321_v58 = vld [vmem:[%s840_s19] ss:$0 sm:$0xff]  ;;  %s3252_s19 = sld [smem:[#allocation20_spill]] (!%p2341_p2) }
 0x65c   : > { %v2605_v54 = vpop.eup %2604 }
 0x65d   : > { %v1267_v59 = vmul.f32 %v2605_v54, %v3031_v53 }
 0x690   : > { %v1482_v33 = vpop.f32.mrb[16].mxu0 }
 0x691   : > { %v2457_v34 = vpop.f32.mrb[17].mxu0  ;;  %v1491_v43 = vmul.f32 %v2599_v37, %v1482_v33  ;;  %v2582_v33 = vld [vmem:[%s2895_s26] sm:$0xff]   ;;  %v2584_v37 = vld [vmem:[%s2895_s26 + $0x8] sm:$0xff]   ;;  %s1694_s26 = sld [smem:[#allocation4 + %s2834_s25]] }
 0x692   : > { %v1485_v35 = vpop.f32.mrb[18].mxu0 }
 0x693   : > { %v2458_v40 = vpop.f32.mrb[19].mxu0  ;;  %v2583_v35 = vld [vmem:[%s2904_s6] sm:$0xff]  }
 0x694   : > { %v1433_v42 = vpop.f32.mrb[12].mxu1  ;;  %v2585_v40 = vld [vmem:[%s2904_s6 + $0x8] sm:$0xff]   ;;  %s3253_s6 = sld [smem:[#allocation23_spill]] (!%p2341_p2) }
 0x695   : > { %v1490_v44 = vmul.f32 %v2601_v41, %v1433_v42  ;;  %v2451_v45 = vpop.f32.mrb[13].mxu1 }
 0x696   : > { %v1436_v46 = vpop.f32.mrb[14].mxu1 }
 0x697   : > { %v2565_v47 = vpack.i.bf16 %v1491_v43, %v1490_v44  ;;  %v2452_v48 = vpop.f32.mrb[15].mxu1  ;;  %v1817_v49 = vstv %s1694_s26 }
 0x699   : > { %2566 = vrot.lane.b32.xlu0 %v2565_v47, %s2694_s0 }
 0x70b   : > { %v2567_v55 = vpop.permute.xlu0 %2566 }
 0x70c   : > { %v2569_v60 = vunpack.i.h.bf16 %v2567_v55  ;;  %v2568_v61 = vunpack.i.l.bf16 %v2567_v55 }
 0x70e   : > { %v1501_v62 = vsel %vm880_vm1, %v1267_v59, %v2569_v60  ;;  %v1500_v63 = vsel %vm880_vm1, %v1266_v57, %v2568_v61 }
 0x70f   : > { %v1502_v0 = vpack.c.bf16 %v1501_v62, %v1500_v63 }
 0x711   : > { %2468 = vmatmul.mubr.msk.bf16.vlgmr.msra.gmra.mrb[16].mxu1 %vm993_vm2, %v1502_v0 }
 0x712   : > { %2491 = vmatprep.mubr.msk.bf16.mxu1 %vm2699_vm5, %v2698_v56  ;;  %2488 = vmatpush3.bf16.msra.mxu1 %v2583_v35 }
 0x713   : > { %2489 = vmatprep.subr.bf16.mxu1 %v2698_v56 }
 0x716   : > { %2490 = vmatpush3.bf16.msra.mxu1 %v2585_v40 }
 0x7e4   : > { %v1579_v1 = vpop.f32.mrb[16].mxu1 }
 0x7e5   : > { %v1580_v53 = vadd.f32 %v2321_v58, %v1579_v1  ;;  %v2469_v2 = vpop.f32.mrb[17].mxu1 }
 0x7e6   : > { %v1582_v3 = vpop.f32.mrb[18].mxu1 }
 0x7e7   : > { %v1586_v4 = vadd.f32 %v1580_v53, %v2940_v38  ;;  %v1583_v5 = vadd.f32 %v2321_v58, %v1582_v3  ;;  %v2470_v6 = vpop.f32.mrb[19].mxu1 }
 0x7e9   : > { %v1587_v7 = vadd.f32 %v1583_v5, %v2943_v39  ;;  %v1588_v8 = vmul.f32 %v1586_v4, %v1586_v4  ;;  %v2335_v5 = vld [vmem:[%s864_s29] ss:$0 sm:$0xff]  ;;  %s3254_s29 = sld [smem:[#allocation21_spill]] (!%p2341_p2) }
 0x7eb   : > { %v1590_v9 = vsel %vm880_vm1, %v1588_v8, 0.0  ;;  %v1589_v10 = vmul.f32 %v1587_v7, %v1587_v7 }
 0x7ec   : > { %1591 = vadd.xlane.f32.xlu1 %v1590_v9 }
 0x7ed   : > { %v1593_v11 = vsel %vm880_vm1, %v1589_v10, 0.0 }
 0x7f0   : > { %1594 = vadd.xlane.f32.xlu1 %v1593_v11 }
 0x879   : > { %v1592_v38 = vpop.xlane.xlu1 %1591 }
 0x87a   : > { %v1596_v14 = vrot.slane %v1592_v38, 4 }
 0x87c   : > { %v1597_v50 = vadd.f32 %v1596_v14, %v1592_v38 }
 0x87d   : > { %v1595_v39 = vpop.xlane.xlu1 %1594 }
 0x87e   : > { %v1598_v16 = vrot.slane %v1597_v50, 2  ;;  %v1602_v18 = vrot.slane %v1595_v39, 4 }
 0x880   : > { %v1599_v19 = vadd.f32 %v1598_v16, %v1597_v50  ;;  %v1603_v15 = vadd.f32 %v1602_v18, %v1595_v39  ;;  %v2618_v50 = vld [vmem:[%s3208_s14] sm:$0xff] (!%p2341_p2)   ;;  %v2700_v39 = vmov (!%p2341_p2), 0.0   ;;  %v2619_v16 = vld [vmem:[%s3208_s14 + $0x8] sm:$0xff] (!%p2341_p2)  }
 0x881   : > { %2503 = vmatprep.subr.bf16.mxu1 (!%p2341_p2), %v2700_v39 }
 0x882   : > { %v1600_v17 = vrot.slane %v1599_v19, 1  ;;  %v1604_v20 = vrot.slane %v1603_v15, 2 }
 0x884   : > { %v1601_v21 = vadd.f32 %v1600_v17, %v1599_v19  ;;  %v1605_v22 = vadd.f32 %v1604_v20, %v1603_v15  ;;  %v2620_v19 = vld [vmem:[%s3210_s16] sm:$0xff] (!%p2341_p2)   ;;  %v2622_v17 = vld [vmem:[%s3210_s16 + $0x8] sm:$0xff] (!%p2341_p2)  }
 0x885   : > { %v2621_v15 = vld [vmem:[%s3212_s18] sm:$0xff] (!%p2341_p2)   ;;  %v2623_v20 = vld [vmem:[%s3212_s18 + $0x8] sm:$0xff] (!%p2341_p2)  }
 0x886   : > { %2606 = vrsqrt.f32 %v1601_v21  ;;  %v1606_v23 = vrot.slane %v1605_v22, 1  ;;  %v2342_v21 = vld [vmem:[%s3252_s19] ss:$0 sm:$0xff] (!%p2341_p2) }
 0x888   : > { %v1607_v24 = vadd.f32 %v1606_v23, %v1605_v22 }
 0x88a   : > { %2608 = vrsqrt.f32 %v1607_v24 }
 0x890   : > { %v2607_v25 = vpop.eup %2606 }
 0x891   : > { %v1610_v26 = vmul.f32 16.0, %v2607_v25 }
 0x893   : > { %v1612_v28 = vmul.f32 %v1610_v26, %v1586_v4 }
 0x894   : > { %v2609_v27 = vpop.eup %2608 }
 0x895   : > { %v1611_v29 = vmul.f32 16.0, %v2609_v27  ;;  %v1614_v31 = vmul.f32 %v1612_v28, %v2937_v36 }
 0x897   : > { %v1613_v30 = vmul.f32 %v1611_v29, %v1587_v7  ;;  %v2624_v29 = vld [vmem:[%s3253_s6] sm:$0xff] (!%p2341_p2)  }
 0x899   : > { %v1615_v32 = vmul.f32 %v1613_v30, %v2937_v36  ;;  %v2327_v36 = vld [vmem:[%s848_s7] ss:$0 sm:$0xff]  ;;  %v2625_v30 = vld [vmem:[%s3253_s6 + $0x8] sm:$0xff] (!%p2341_p2)  }
 0x89b   : > { %v1616_v34 = vpack.c.bf16 %v1615_v32, %v1614_v31 }
 0x89d   : > { %2476 = vmatmul.mubr.msk.bf16.vlgmr.msra.gmra.mrb[20].mxu0 %vm880_vm1, %v1616_v34 }
 0x89e   : > { %2480 = vmatpush3.bf16.msra.mxu0 %v2582_v33  ;;  %2483 = vmatprep.mubr.msk.bf16.mxu0 %vm2699_vm5, %v2698_v56 }
 0x89f   : > { %2481 = vmatprep.subr.bf16.mxu0 %v2698_v56  ;;  %v2331_v56 = vld [vmem:[%s856_s23] ss:$0 sm:$0xff]  ;;  %s1922_s23 = sld [smem:[#allocation3]] (!%p2341_p2) }
 0x8a2   : > { %2482 = vmatpush3.bf16.msra.mxu0 %v2584_v37 }
 0x8a3   : > { %2495 = vmatprep.subr.bf16.mxu0 (!%p2341_p2), %v2700_v39 }
 0x8a5   : > { %v2045_v33 = vstv (!%p2341_p2), %s1922_s23 }
 0x970   : > { %v1677_v41 = vpop.f32.mrb[20].mxu0 }
 0x971   : > { %v2477_v42 = vpop.f32.mrb[21].mxu0  ;;  %v1678_v44 = vadd.f32 %v2327_v36, %v1677_v41 }
 0x972   : > { %v1680_v43 = vpop.f32.mrb[22].mxu0 }
 0x973   : > { %v1681_v45 = vadd.f32 %v2327_v36, %v1680_v43  ;;  %v2478_v46 = vpop.f32.mrb[23].mxu0 }
 0x975   : > { %v1695_v47 = vpack.c.bf16 %v1681_v45, %v1678_v44 }
 0x977   : > { %2484 = vmatmul.mubr.msk.bf16.vlgmr.msra.gmra.mrb[24].mxu0 %vm880_vm1, %v1695_v47  ;;  %2492 = vmatmul.mubr.msk.bf16.vlgmr.msra.gmra.mrb[20].mxu1 %vm880_vm1, %v1695_v47 }
 0x978   : > { %2496 = vmatpush3.bf16.msra.mxu0 (!%p2341_p2), %v2618_v50  ;;  %2499 = vmatprep.mubr.msk.bf16.mxu0 (!%p2341_p2), %vm2701_vm9, %v2700_v39 }
 0x979   : > { %2497 = vmatprep.subr.bf16.mxu0 (!%p2341_p2), %v2700_v39  ;;  %2507 = vmatprep.mubr.msk.bf16.mxu1 (!%p2341_p2), %vm2701_vm9, %v2700_v39 }
 0x97a   : > { %2504 = vmatpush3.bf16.msra.mxu1 (!%p2341_p2), %v2620_v19 }
 0x97b   : > { %2505 = vmatprep.subr.bf16.mxu1 (!%p2341_p2), %v2700_v39 }
 0x97c   : > { %2498 = vmatpush3.bf16.msra.mxu0 (!%p2341_p2), %v2619_v16 }
 0x97d   : > { %2511 = vmatprep.subr.bf16.mxu0 (!%p2341_p2), %v2700_v39 }
 0x97e   : > { %2506 = vmatpush3.bf16.msra.mxu1 (!%p2341_p2), %v2622_v17 }
 0x97f   : > { %2519 = vmatprep.subr.bf16.mxu1 (!%p2341_p2), %v2700_v39 }
 0xa4a   : > { %v1751_v48 = vpop.f32.mrb[24].mxu0  ;;  %v1810_v51 = vpop.f32.mrb[20].mxu1 }
 0xa4b   : > { %v1752_v52 = vadd.f32 %v2331_v56, %v1751_v48  ;;  %v2485_v54 = vpop.f32.mrb[25].mxu0  ;;  %v2493_v55 = vpop.f32.mrb[21].mxu1  ;;  %v1811_v8 = vadd.f32 %v2335_v5, %v1810_v51 }
 0xa4c   : > { %v1754_v57 = vpop.f32.mrb[26].mxu0  ;;  %v1813_v59 = vpop.f32.mrb[22].mxu1  ;;  %v2350_v54 = vld [vmem:[%s3255_s20] ss:$0 sm:$0xff] (!%p2341_p2) }
 0xa4d   : > { %v1818_v60 = vmul.f32 %v1817_v49, %v1752_v52  ;;  %v1755_v61 = vadd.f32 %v2331_v56, %v1754_v57  ;;  %v2486_v62 = vpop.f32.mrb[27].mxu0  ;;  %v2494_v63 = vpop.f32.mrb[23].mxu1  ;;  %v1814_v12 = vadd.f32 %v2335_v5, %v1813_v59 }
 0xa4f   : > { %v2339_v0 = vmul.f32 -1.442695, %v1818_v60  ;;  %v1819_v58 = vmul.f32 %v1817_v49, %v1755_v61 }
 0xa51   : > { %2610 = vpow2.f32 %v2339_v0  ;;  %v2340_v1 = vmul.f32 -1.442695, %v1819_v58 }
 0xa53   : > { %2612 = vpow2.f32 %v2340_v1  ;;  %v2356_v1 = vld [vmem:[%s3256_s1] ss:$0 sm:$0xff] (!%p2341_p2) }
 0xa5b   : > { %v2611_v53 = vpop.eup %2610 }
 0xa5c   : > { %v1826_v2 = vadd.f32 1.0, %v2611_v53 }
 0xa5d   : > { %v2613_v3 = vpop.eup %2612 }
 0xa5e   : > { %2614 = vrcp.f32 %v1826_v2  ;;  %v1827_v4 = vadd.f32 1.0, %v2613_v3 }
 0xa60   : > { %2616 = vrcp.f32 %v1827_v4 }
 0xa68   : > { %v2615_v6 = vpop.eup %2614 }
 0xa69   : > { %v1832_v7 = vmul.f32 %v2615_v6, %v1752_v52 }
 0xa6a   : > { %v2617_v9 = vpop.eup %2616 }
 0xa6b   : > { %v1834_v10 = vmul.f32 %v1832_v7, %v1811_v8  ;;  %v1833_v11 = vmul.f32 %v2617_v9, %v1755_v61  ;;  %1843 = sbr.rel (%p2341_p2) target bundleno = 3360 (0xd20), region = 124 }
 0xa6d   : > { %v1836_v13 = vadd.f32 %v1834_v10, %v1614_v31  ;;  %v1835_v38 = vmul.f32 %v1833_v11, %v1814_v12  ;;  %v2346_v31 = vld [vmem:[%s3254_s29] ss:$0 sm:$0xff] (!%p2341_p2) }
 0xa6f   : > { %1838 = vst.msk [vmem:[#allocation2] sm:$0xff] %vm880_vm1, %v1836_v13  ;;  %v1837_v14 = vadd.f32 %v1835_v38, %v1615_v32 }
 0xa71   : > { %1839 = vst.msk [vmem:[#allocation2 + $0x8] sm:$0xff] %vm880_vm1, %v1837_v14  ;;  %v1844_v18 = vpack.c.bf16 (!%p2341_p2), %v1837_v14, %v1836_v13 }
 0xa73   : > { %2500 = vmatmul.mubr.msk.bf16.vlgmr.msra.gmra.mrb[0].mxu0 %vm880_vm1, %v1844_v18 }
 0xa74   : > { %2515 = vmatprep.mubr.msk.bf16.mxu0 %vm2701_vm9, %v2700_v39  ;;  %2512 = vmatpush3.bf16.msra.mxu0 %v2621_v15 }
 0xa75   : > { %2513 = vmatprep.subr.bf16.mxu0 %v2700_v39 }
 0xa78   : > { %2514 = vmatpush3.bf16.msra.mxu0 %v2623_v20 }
 0xb46   : > { %v1905_v22 = vpop.f32.mrb[0].mxu0 }
 0xb47   : > { %v2501_v23 = vpop.f32.mrb[1].mxu0  ;;  %v1906_v25 = vadd.f32 %v2342_v21, %v1905_v22 }
 0xb48   : > { %v1908_v24 = vpop.f32.mrb[2].mxu0 }
 0xb49   : > { %v1909_v26 = vadd.f32 %v2342_v21, %v1908_v24  ;;  %v2502_v27 = vpop.f32.mrb[3].mxu0 }
 0xb4b   : > { %v1923_v28 = vpack.c.bf16 %v1909_v26, %v1906_v25 }
 0xb4d   : > { %2508 = vmatmul.mubr.msk.bf16.vlgmr.msra.gmra.mrb[0].mxu1 %vm880_vm1, %v1923_v28  ;;  %2516 = vmatmul.mubr.msk.bf16.vlgmr.msra.gmra.mrb[4].mxu0 %vm880_vm1, %v1923_v28 }
 0xb4e   : > { %2523 = vmatprep.mubr.msk.bf16.mxu1 %vm2701_vm9, %v2700_v39  ;;  %2520 = vmatpush3.bf16.msra.mxu1 %v2624_v29 }
 0xb4f   : > { %2521 = vmatprep.subr.bf16.mxu1 %v2700_v39 }
 0xb52   : > { %2522 = vmatpush3.bf16.msra.mxu1 %v2625_v30 }
 0xc20   : > { %v1979_v32 = vpop.f32.mrb[0].mxu1  ;;  %v2038_v34 = vpop.f32.mrb[4].mxu0 }
 0xc21   : > { %v1980_v35 = vadd.f32 %v2346_v31, %v1979_v32  ;;  %v2509_v37 = vpop.f32.mrb[1].mxu1  ;;  %v2517_v40 = vpop.f32.mrb[5].mxu0  ;;  %v2039_v59 = vadd.f32 %v2350_v54, %v2038_v34 }
 0xc22   : > { %v1982_v36 = vpop.f32.mrb[2].mxu1  ;;  %v2041_v41 = vpop.f32.mrb[6].mxu0 }
 0xc23   : > { %v2046_v42 = vmul.f32 %v2045_v33, %v1980_v35  ;;  %v1983_v43 = vadd.f32 %v2346_v31, %v1982_v36  ;;  %v2510_v44 = vpop.f32.mrb[3].mxu1  ;;  %v2518_v45 = vpop.f32.mrb[7].mxu0  ;;  %v2042_v63 = vadd.f32 %v2350_v54, %v2041_v41 }
 0xc25   : > { %v2354_v46 = vmul.f32 -1.442695, %v2046_v42  ;;  %v2047_v47 = vmul.f32 %v2045_v33, %v1983_v43 }
 0xc27   : > { %2626 = vpow2.f32 %v2354_v46  ;;  %v2355_v56 = vmul.f32 -1.442695, %v2047_v47 }
 0xc29   : > { %2628 = vpow2.f32 %v2355_v56 }
 0xc31   : > { %v2627_v48 = vpop.eup %2626 }
 0xc32   : > { %v2054_v49 = vadd.f32 1.0, %v2627_v48 }
 0xc33   : > { %v2629_v51 = vpop.eup %2628 }
 0xc34   : > { %2630 = vrcp.f32 %v2054_v49  ;;  %v2055_v52 = vadd.f32 1.0, %v2629_v51 }
 0xc36   : > { %2632 = vrcp.f32 %v2055_v52 }
 0xc3e   : > { %v2631_v55 = vpop.eup %2630 }
 0xc3f   : > { %v2060_v57 = vmul.f32 %v2631_v55, %v1980_v35 }
 0xc40   : > { %v2633_v60 = vpop.eup %2632 }
 0xc41   : > { %v2062_v61 = vmul.f32 %v2060_v57, %v2039_v59  ;;  %v2061_v62 = vmul.f32 %v2633_v60, %v1983_v43 }
 0xc43   : > { %v2063_v0 = vmul.f32 %v2061_v62, %v2042_v63 }
 0xc45   : > { %v2064_v58 = vpack.c.bf16 %v2063_v0, %v2062_v61 }
 0xc47   : > { %2524 = vmatmul.mubr.msk.bf16.vlgmr.msra.gmra.mrb[4].mxu1 %vm880_vm1, %v2064_v58 }
 0xd1a   : > { %v2125_v53 = vpop.f32.mrb[4].mxu1 }
 0xd1b   : > { %v2126_v2 = vadd.f32 %v2356_v1, %v2125_v53  ;;  %v2525_v3 = vpop.f32.mrb[5].mxu1 }
 0xd1c   : > { %v2128_v4 = vpop.f32.mrb[6].mxu1 }
 0xd1d   : > { %2132 = vst [vmem:[#allocation7] sm:$0xff] %v2126_v2  ;;  %v2129_v5 = vadd.f32 %v2356_v1, %v2128_v4  ;;  %v2526_v6 = vpop.f32.mrb[7].mxu1 }
 0xd1f   : > { %2133 = vst [vmem:[#allocation7 + $0x8] sm:$0xff] %v2129_v5 }
 0xd20 PF: > { %p2541_p3 = scmp.eq.s32.totalorder %s2834_s25, 1  ;;  %s2702_s5 = smov [#allocation7]  }
 0xd21   : > { %s2140_s28 = sshll.u32 %s2702_s5, 4  ;;  %s2141_s28 = int_to_ptr.vmem [resolvable:$true] %s2140_s28 }
 0xd22   : > { %s2649_s13 = scalar_lea.vmem %s2141_s28, 256  ;;  %p2656_p7 = scmp.lt.s32.totalorder %s2141_s28, %s2141_s28 }
 0xd23   : > { %p2650_p4 = scmp.ne.s32.totalorder %s2141_s28, %s2649_s13  ;;  %p2657_p8 = scmp.lt.s32.totalorder %s2649_s13, %s2649_s13 }
 0xd25   : > { %p2651_p5 = pnand %p2650_p4, %p2541_p3  ;;  %p2658_p9 = por %p2657_p8, %p2656_p7 }
 0xd27   : > { %p2652_p6 = pneg %p2651_p5 }
 0xd29   : > { %p2659_p10 = pnand %p2658_p9, %p2652_p6 }
 0xd2b   : > { %2662 = shalt.err (!%p2659_p10)
}
 0xd2c   : > { %s3257_s19 = sld [smem:[#allocation25_spill]] }
 0xd32   : > { %s2663_s30 = scalar_lea.hbm %s3257_s19, 256 }
 0xd33   : > { %p2664_p11 = scmp.ne.s32.totalorder %s3257_s19, %s2663_s30  ;;  %p2669_p0 = scmp.lt.u32.totalorder %s2663_s30, %s3257_s19 }
 0xd35   : > { %p2665_p12 = pnand %p2664_p11, %p2541_p3 }
 0xd37   : > { %p2666_p13 = pneg %p2665_p12 }
 0xd39   : > { %p2671_p1 = pnand %p2669_p0, %p2666_p13 }
 0xd3b   : > { %2674 = shalt.err (!%p2671_p1)
}
 0xd3c   : > { %s2703_s21 = smov 128   ;;  %s2704_s27 = smov 8  }
 0xd3d   : > { %2532 = dma.vmem_to_hbm [thread:$0]  (%p2541_p3), %s2141_s28, 256, %s3257_s19, [#allocation5], %s2703_s21, %s2703_s21, %s2704_s27  }
 0xd3e   : > { %2684 = dma.done.wait (%p2541_p3), [#allocation5], 256  }
 0xd3f   : > { %2686 = vsyncadd (%p2541_p3), [#allocation5], 4294967040 }
 0xd40 PF: > { %s3258_s15 = sld [smem:[#allocation10_spill]] }
 0xd46   : > { %s36_s24 = sadd.s32 1, %s3258_s15  }
 0xd47   : > { %p33_p2 = scmp.ge.s32.totalorder %s36_s24, 4  }
 0xd49   :  { %35 = sbr.rel (!%p33_p2) target bundleno = 19 (0x13), region = 179 }
 0xd50   :  { %2156 = vsyncpa [#allocation5], 1 }
 0xd51   :  { %2158 = vsyncpa [#allocation5 + $0x1], 1 }
 0xd52   :  { %2159 = vsyncpa [#allocation6], 1 }
 0xd53   :  { %2161 = vsyncpa [#allocation6 + $0x1], 1 }

</bundles_post_ra>
